<compile_context>
chip_gen: v5e
topology: v5e:2x2
jax: 0.10.0
libtpu: 0.0.40
codegen_flags: <defaults>
</compile_context>

<pallas_src>
import numpy as np
import jax
import jax.numpy as jnp
from jax.experimental import pallas as pl
from jax.experimental.pallas import tpu as pltpu


def _round_up(v, m):
    return ((v + m - 1) // m) * m


# ----------------------------------------------------------------------------
# Pallas kernel factory: full ResidualRefinementBlock forward for one batch element.
# ----------------------------------------------------------------------------
def make_rrb_kernel(H, W, cin_p, cout_p, mm_dtype):
    HW = H * W
    TAP_OFFS = [(dh - 1) * W + (dw - 1) for dh in range(3) for dw in range(3)]

    def kernel(x_ref, m_ref, wslab_ref, bslab_ref, out_ref):
        x = x_ref[0]                                   # (cin_p, HW) f32, channels on sublanes

        def wblk(blk, width):                          # static, tile-aligned slab views
            return wslab_ref[blk * cout_p:(blk + 1) * cout_p, 0:width]

        def bblk(blk):
            return bslab_ref[blk * cout_p:(blk + 1) * cout_p, :]

        def im2col(inp):
            # (Cin, HW) -> (9*Cin, HW): rows [k*Cin:(k+1)*Cin] hold tap k of the SAME
            # 3x3 neighbourhood.  Spatial shift = lane roll (XLU); SAME zero padding =
            # boundary mask multiply (VPU).  All in f32 (keeps v5e's VPU happy).
            cols = []
            for k, off in enumerate(TAP_OFFS):
                t = inp
                if off != 0:
                    t = pltpu.roll(t, (-off) % HW, axis=1)
                    t = t * m_ref[k:k + 1, :]
                cols.append(t)
            return jnp.concatenate(cols, axis=0)

        def conv3x3(inp, cin, blk):
            # One fused MXU matmul per conv: contraction over 9*cin.
            xcol = im2col(inp)
            y = jnp.dot(wblk(blk, 9 * cin).astype(mm_dtype), xcol.astype(mm_dtype),
                        preferred_element_type=jnp.float32)
            return y + bblk(blk)

        def dab(inp, cin, blk0):
            h = jnp.maximum(conv3x3(inp, cin, blk0), 0.0)
            out = conv3x3(h, cout_p, blk0 + 1)                     # (cout_p, HW)
            # Fused attention path: run the shared MLP once on [avg | max] columns.
            avg = jnp.mean(out, axis=1, keepdims=True)             # (cout_p, 1)
            mx = jnp.max(out, axis=1, keepdims=True)               # (cout_p, 1)
            pooled = jnp.concatenate([avg, mx], axis=1)            # (cout_p, 2)
            a1 = jnp.maximum(
                jnp.dot(wblk(blk0 + 2, cout_p).astype(jnp.float32), pooled,
                        preferred_element_type=jnp.float32) + bblk(blk0 + 2), 0.0)
            a2 = (jnp.dot(wblk(blk0 + 3, cout_p).astype(jnp.float32), a1,
                          preferred_element_type=jnp.float32) + bblk(blk0 + 3))
            att = jax.nn.sigmoid(a2[:, 0:1] * a2[:, 1:2])          # sigmoid(att(avg)*att(max))
            return out * att                                       # channel gate

        d1 = dab(x, cin_p, 0)
        d2 = dab(d1, cout_p, 4)

        # 1x1 merge conv on concat([d1, d2]) as a single matmul (contraction = 2*cout_p).
        dcat = jnp.concatenate([d1, d2], axis=0)                   # (2*cout_p, HW)
        merged = (jnp.dot(wblk(8, 2 * cout_p).astype(mm_dtype), dcat.astype(mm_dtype),
                          preferred_element_type=jnp.float32) + bblk(8))
        out_ref[0] = merged.astype(out_ref.dtype)

    return kernel


# ----------------------------------------------------------------------------
# Host-side prep.
# ----------------------------------------------------------------------------
def build_tap_masks(H, W):
    """mask[k, h*W+w] = 1 iff the input pixel read by tap k at output (h, w) is in-bounds."""
    hh = np.arange(H)[:, None]
    ww = np.arange(W)[None, :]
    rows = []
    for dh in (-1, 0, 1):
        for dw in (-1, 0, 1):
            m = (hh + dh >= 0) & (hh + dh < H) & (ww + dw >= 0) & (ww + dw < W)
            rows.append(m.reshape(-1))
    return jnp.asarray(np.stack(rows), dtype=jnp.float32)          # (9, H*W)


def _conv_w_to_cols(w_oihw, cin_p, cout_p):
    """(Cout, Cin, 3, 3) OIHW -> (cout_p, 9*cin_p); cols [k*cin_p:(k+1)*cin_p] = tap k=kh*3+kw."""
    o, i = w_oihw.shape[0], w_oihw.shape[1]
    w = jnp.transpose(w_oihw, (0, 2, 3, 1))                        # (O, kh, kw, I)
    w = jnp.pad(w, ((0, cout_p - o), (0, 0), (0, 0), (0, cin_p - i)))
    return w.reshape(cout_p, 9 * cin_p)


def _pad2(mat, rows, cols):
    return jnp.pad(mat, ((0, rows - mat.shape[0]), (0, cols - mat.shape[1])))


def prep_slabs(params, cin_p, cout_p):
    """Pack all weights into one sublane-aligned f32 slab, all biases into another."""
    cout = params['bm'].shape[0]
    lane_w = max(9 * cin_p, 9 * cout_p, 2 * cout_p)

    wm = params['wm']                                              # (cout, 2*cout)
    wm_p = jnp.zeros((cout_p, 2 * cout_p), jnp.float32)
    wm_p = wm_p.at[:cout, :cout].set(wm[:, :cout])
    wm_p = wm_p.at[:cout, cout_p:cout_p + cout].set(wm[:, cout:])

    wmats = [
        _conv_w_to_cols(params['w1a'], cin_p, cout_p),             # block 0
        _conv_w_to_cols(params['w2a'], cout_p, cout_p),            # block 1
        _pad2(params['aw1a'], cout_p, cout_p),                     # block 2
        _pad2(params['aw2a'], cout_p, cout_p),                     # block 3
        _conv_w_to_cols(params['w1b'], cout_p, cout_p),            # block 4
        _conv_w_to_cols(params['w2b'], cout_p, cout_p),            # block 5
        _pad2(params['aw1b'], cout_p, cout_p),                     # block 6
        _pad2(params['aw2b'], cout_p, cout_p),                     # block 7
        wm_p,                                                      # block 8
    ]
    biases = [params[n] for n in
              ('b1a', 'b2a', 'ab1a', 'ab2a', 'b1b', 'b2b', 'ab1b', 'ab2b', 'bm')]

    wslab = jnp.concatenate([_pad2(m, cout_p, lane_w) for m in wmats], axis=0)
    bslab = jnp.concatenate(
        [jnp.pad(b, (0, cout_p - b.shape[0])).reshape(cout_p, 1) for b in biases], axis=0)
    return wslab.astype(jnp.float32), bslab.astype(jnp.float32)


def rrb_forward(x_nchw, params, *, matmul_dtype=jnp.float32):
    N, Cin, H, W = x_nchw.shape
    HW = H * W
    Cout = params['bm'].shape[0]
    Cin_p = _round_up(Cin, 8)                                      # sublane-aligned channel counts
    Cout_p = _round_up(Cout, 8)

    x = x_nchw.reshape(N, Cin, HW)                                 # NCHW: channels already major
    x = jnp.pad(x, ((0, 0), (0, Cin_p - Cin), (0, 0)))             # zero-pad channels
    masks = build_tap_masks(H, W)
    wslab, bslab = prep_slabs(params, Cin_p, Cout_p)

    kernel = make_rrb_kernel(H, W, Cin_p, Cout_p, matmul_dtype)
    out = pl.pallas_call(
        kernel,
        out_shape=jax.ShapeDtypeStruct((N, Cout_p, HW), jnp.float32),
        grid_spec=pltpu.PrefetchScalarGridSpec(
            num_scalar_prefetch=0,
            grid=(N,),
            in_specs=[
                pl.BlockSpec((1, Cin_p, HW), lambda b: (b, 0, 0)),
                pl.BlockSpec(masks.shape, lambda b: (0, 0)),
                pl.BlockSpec(wslab.shape, lambda b: (0, 0)),
                pl.BlockSpec(bslab.shape, lambda b: (0, 0)),
            ],
            out_specs=pl.BlockSpec((1, Cout_p, HW), lambda b: (b, 0, 0))),
        compiler_params=pltpu.CompilerParams(
            dimension_semantics=("parallel",),                     # batch -> megacore / 2 TCs
            vmem_limit_bytes=32 * 1024 * 1024),
    )(x, masks, wslab, bslab)

    return out[:, :Cout, :].reshape(N, Cout, H, W)


# ----------------------------------------------------------------------------
# Pure-JAX reference (matches PyTorch semantics) for validation.
# ----------------------------------------------------------------------------
def _conv3x3_ref(x, w, b):
    y = jax.lax.conv_general_dilated(x, w, (1, 1), 'SAME',
                                     dimension_numbers=('NCHW', 'OIHW', 'NCHW'),
                                     precision=jax.lax.Precision.HIGHEST)
    return y + b.reshape(1, -1, 1, 1)


def _dab_ref(x, p, blk):
    h = jax.nn.relu(_conv3x3_ref(x, p['w1' + blk], p['b1' + blk]))
    out = _conv3x3_ref(h, p['w2' + blk], p['b2' + blk])
    avg = jnp.mean(out, axis=(2, 3), keepdims=True)
    mx = jnp.max(out, axis=(2, 3), keepdims=True)

    def att(v):
        v1 = jax.nn.relu(jnp.einsum('oc,nchw->nohw', p['aw1' + blk], v,
                                    precision=jax.lax.Precision.HIGHEST)
                         + p['ab1' + blk].reshape(1, -1, 1, 1))
        return (jnp.einsum('oc,nchw->nohw', p['aw2' + blk], v1,
                           precision=jax.lax.Precision.HIGHEST)
                + p['ab2' + blk].reshape(1, -1, 1, 1))

    return out * jax.nn.sigmoid(att(avg) * att(mx))


def rrb_ref(x_nchw, p):
    d1 = _dab_ref(x_nchw, p, 'a')
    d2 = _dab_ref(d1, p, 'b')
    cat = jnp.concatenate([d1, d2], axis=1)
    return (jnp.einsum('oc,nchw->nohw', p['wm'], cat,
                       precision=jax.lax.Precision.HIGHEST)
            + p['bm'].reshape(1, -1, 1, 1))


# ----------------------------------------------------------------------------
def init_params(key, cin, cout):
    shapes = {
        'w1a': (cout, cin, 3, 3), 'b1a': (cout,),
        'w2a': (cout, cout, 3, 3), 'b2a': (cout,),
        'aw1a': (cout, cout), 'ab1a': (cout,),
        'aw2a': (cout, cout), 'ab2a': (cout,),
        'w1b': (cout, cout, 3, 3), 'b1b': (cout,),
        'w2b': (cout, cout, 3, 3), 'b2b': (cout,),
        'aw1b': (cout, cout), 'ab1b': (cout,),
        'aw2b': (cout, cout), 'ab2b': (cout,),
        'wm': (cout, 2 * cout), 'bm': (cout,),
    }
    ks = jax.random.split(key, len(shapes))
    return {name: 0.1 * jax.random.normal(k, shp, jnp.float32)
            for (name, shp), k in zip(shapes.items(), ks)}


if __name__ == "__main__":
    N, Cin, Cout, H, W = 2, 4, 8, 16, 16
    key = jax.random.PRNGKey(0)
    kx, kp = jax.random.split(key)

    x = jax.random.normal(kx, (N, Cin, H, W), jnp.float32)         # NCHW, like PyTorch
    params = init_params(kp, Cin, Cout)

    ref = jax.block_until_ready(rrb_ref(x, params))

    # f32 matmul operands: tight check against the f32 reference.
    out_f32 = jax.block_until_ready(rrb_forward(x, params, matmul_dtype=jnp.float32))
    assert out_f32.shape == (N, Cout, H, W), out_f32.shape
    np.testing.assert_allclose(np.asarray(out_f32), np.asarray(ref), rtol=1e-3, atol=1e-3)

    # bf16 matmul operands (v6e/v7x MXU fast path), f32 accumulation: looser tolerance.
    out_bf16 = jax.block_until_ready(rrb_forward(x, params, matmul_dtype=jnp.bfloat16))
    np.testing.assert_allclose(np.asarray(out_bf16), np.asarray(ref), rtol=5e-2, atol=5e-2)

    print("KERNEL_OK")
</pallas_src>

<mosaic_0001>
module attributes {stable_mosaic.version = 11 : i64} {
  func.func @kernel(%arg0: i32, %arg1: memref<1x8x256xf32, #tpu.memory_space<vmem>>, %arg2: memref<9x256xf32, #tpu.memory_space<vmem>>, %arg3: memref<72x72xf32, #tpu.memory_space<vmem>>, %arg4: memref<72x1xf32, #tpu.memory_space<vmem>>, %arg5: memref<1x8x256xf32, #tpu.memory_space<vmem>>) attributes {dimension_semantics = [#tpu.dimension_semantics<parallel>], iteration_bounds = array<i64: 2>, scalar_prefetch = 0 : i64, scratch_operands = 0 : i64, tpu.core_type = #tpu.core_type<tc>, window_params = [{transform_indices = @transform_0, window_bounds = array<i64: 1, 8, 256>}, {pipeline_mode = #tpu.pipeline_mode<synchronous>, transform_indices = @transform_1, window_bounds = array<i64: 9, 256>}, {pipeline_mode = #tpu.pipeline_mode<synchronous>, transform_indices = @transform_2, window_bounds = array<i64: 72, 72>}, {pipeline_mode = #tpu.pipeline_mode<synchronous>, transform_indices = @transform_3, window_bounds = array<i64: 72, 1>}, {transform_indices = @transform_4, window_bounds = array<i64: 1, 8, 256>}]} {
    %c0 = arith.constant 0 : index
    %c0_0 = arith.constant 0 : index
    %c0_1 = arith.constant 0 : index
    %0 = vector.load %arg1[%c0, %c0_0, %c0_1] : memref<1x8x256xf32, #tpu.memory_space<vmem>>, vector<1x8x256xf32>
    %1 = vector.shape_cast %0 : vector<1x8x256xf32> to vector<8x256xf32>
    %c17_i32 = arith.constant 17 : i32
    %2 = tpu.dynamic_rotate %1 by %c17_i32 dim 1 : vector<8x256xf32>, i32 -> vector<8x256xf32>
    %c0_2 = arith.constant 0 : index
    %c0_3 = arith.constant 0 : index
    %3 = vector.load %arg2[%c0_2, %c0_3] : memref<9x256xf32, #tpu.memory_space<vmem>>, vector<1x256xf32>
    %4 = vector.broadcast %3 : vector<1x256xf32> to vector<8x256xf32>
    %5 = arith.mulf %2, %4 : vector<8x256xf32>
    %c16_i32 = arith.constant 16 : i32
    %6 = tpu.dynamic_rotate %1 by %c16_i32 dim 1 : vector<8x256xf32>, i32 -> vector<8x256xf32>
    %c1 = arith.constant 1 : index
    %c0_4 = arith.constant 0 : index
    %7 = vector.load %arg2[%c1, %c0_4] : memref<9x256xf32, #tpu.memory_space<vmem>>, vector<1x256xf32>
    %8 = vector.broadcast %7 : vector<1x256xf32> to vector<8x256xf32>
    %9 = arith.mulf %6, %8 : vector<8x256xf32>
    %c15_i32 = arith.constant 15 : i32
    %10 = tpu.dynamic_rotate %1 by %c15_i32 dim 1 : vector<8x256xf32>, i32 -> vector<8x256xf32>
    %c2 = arith.constant 2 : index
    %c0_5 = arith.constant 0 : index
    %11 = vector.load %arg2[%c2, %c0_5] : memref<9x256xf32, #tpu.memory_space<vmem>>, vector<1x256xf32>
    %12 = vector.broadcast %11 : vector<1x256xf32> to vector<8x256xf32>
    %13 = arith.mulf %10, %12 : vector<8x256xf32>
    %c1_i32 = arith.constant 1 : i32
    %14 = tpu.dynamic_rotate %1 by %c1_i32 dim 1 : vector<8x256xf32>, i32 -> vector<8x256xf32>
    %c3 = arith.constant 3 : index
    %c0_6 = arith.constant 0 : index
    %15 = vector.load %arg2[%c3, %c0_6] : memref<9x256xf32, #tpu.memory_space<vmem>>, vector<1x256xf32>
    %16 = vector.broadcast %15 : vector<1x256xf32> to vector<8x256xf32>
    %17 = arith.mulf %14, %16 : vector<8x256xf32>
    %c255_i32 = arith.constant 255 : i32
    %18 = tpu.dynamic_rotate %1 by %c255_i32 dim 1 : vector<8x256xf32>, i32 -> vector<8x256xf32>
    %c5 = arith.constant 5 : index
    %c0_7 = arith.constant 0 : index
    %19 = vector.load %arg2[%c5, %c0_7] : memref<9x256xf32, #tpu.memory_space<vmem>>, vector<1x256xf32>
    %20 = vector.broadcast %19 : vector<1x256xf32> to vector<8x256xf32>
    %21 = arith.mulf %18, %20 : vector<8x256xf32>
    %c241_i32 = arith.constant 241 : i32
    %22 = tpu.dynamic_rotate %1 by %c241_i32 dim 1 : vector<8x256xf32>, i32 -> vector<8x256xf32>
    %c6 = arith.constant 6 : index
    %c0_8 = arith.constant 0 : index
    %23 = vector.load %arg2[%c6, %c0_8] : memref<9x256xf32, #tpu.memory_space<vmem>>, vector<1x256xf32>
    %24 = vector.broadcast %23 : vector<1x256xf32> to vector<8x256xf32>
    %25 = arith.mulf %22, %24 : vector<8x256xf32>
    %c240_i32 = arith.constant 240 : i32
    %26 = tpu.dynamic_rotate %1 by %c240_i32 dim 1 : vector<8x256xf32>, i32 -> vector<8x256xf32>
    %c7 = arith.constant 7 : index
    %c0_9 = arith.constant 0 : index
    %27 = vector.load %arg2[%c7, %c0_9] : memref<9x256xf32, #tpu.memory_space<vmem>>, vector<1x256xf32>
    %28 = vector.broadcast %27 : vector<1x256xf32> to vector<8x256xf32>
    %29 = arith.mulf %26, %28 : vector<8x256xf32>
    %c239_i32 = arith.constant 239 : i32
    %30 = tpu.dynamic_rotate %1 by %c239_i32 dim 1 : vector<8x256xf32>, i32 -> vector<8x256xf32>
    %c8 = arith.constant 8 : index
    %c0_10 = arith.constant 0 : index
    %31 = vector.load %arg2[%c8, %c0_10] : memref<9x256xf32, #tpu.memory_space<vmem>>, vector<1x256xf32>
    %32 = vector.broadcast %31 : vector<1x256xf32> to vector<8x256xf32>
    %33 = arith.mulf %30, %32 : vector<8x256xf32>
    %34 = tpu.concatenate %5, %9, %13, %17, %1, %21, %25, %29, %33 in 0 : vector<8x256xf32>, vector<8x256xf32>, vector<8x256xf32>, vector<8x256xf32>, vector<8x256xf32>, vector<8x256xf32>, vector<8x256xf32>, vector<8x256xf32>, vector<8x256xf32> -> vector<72x256xf32>
    %c0_11 = arith.constant 0 : index
    %c0_12 = arith.constant 0 : index
    %35 = vector.load %arg3[%c0_11, %c0_12] : memref<72x72xf32, #tpu.memory_space<vmem>>, vector<8x72xf32>
    %cst = arith.constant dense<0.000000e+00> : vector<8x256xf32>
    %36 = tpu.matmul %35, %34, %cst {dimension_numbers = #tpu.dot_dimension_numbers<[1], [0], [0], [1], [0, 0, 1, 1], [], []>} : vector<8x72xf32>, vector<72x256xf32>, vector<8x256xf32> -> vector<8x256xf32>
    %c0_13 = arith.constant 0 : index
    %c0_14 = arith.constant 0 : index
    %37 = vector.load %arg4[%c0_13, %c0_14] : memref<72x1xf32, #tpu.memory_space<vmem>>, vector<8x1xf32>
    %38 = vector.broadcast %37 : vector<8x1xf32> to vector<8x256xf32>
    %39 = arith.addf %36, %38 : vector<8x256xf32>
    %cst_15 = arith.constant 0.000000e+00 : f32
    %40 = vector.broadcast %cst_15 : f32 to vector<8x256xf32>
    %41 = arith.maximumf %39, %40 : vector<8x256xf32>
    %c17_i32_16 = arith.constant 17 : i32
    %42 = tpu.dynamic_rotate %41 by %c17_i32_16 dim 1 : vector<8x256xf32>, i32 -> vector<8x256xf32>
    %c0_17 = arith.constant 0 : index
    %c0_18 = arith.constant 0 : index
    %43 = vector.load %arg2[%c0_17, %c0_18] : memref<9x256xf32, #tpu.memory_space<vmem>>, vector<1x256xf32>
    %44 = vector.broadcast %43 : vector<1x256xf32> to vector<8x256xf32>
    %45 = arith.mulf %42, %44 : vector<8x256xf32>
    %c16_i32_19 = arith.constant 16 : i32
    %46 = tpu.dynamic_rotate %41 by %c16_i32_19 dim 1 : vector<8x256xf32>, i32 -> vector<8x256xf32>
    %c1_20 = arith.constant 1 : index
    %c0_21 = arith.constant 0 : index
    %47 = vector.load %arg2[%c1_20, %c0_21] : memref<9x256xf32, #tpu.memory_space<vmem>>, vector<1x256xf32>
    %48 = vector.broadcast %47 : vector<1x256xf32> to vector<8x256xf32>
    %49 = arith.mulf %46, %48 : vector<8x256xf32>
    %c15_i32_22 = arith.constant 15 : i32
    %50 = tpu.dynamic_rotate %41 by %c15_i32_22 dim 1 : vector<8x256xf32>, i32 -> vector<8x256xf32>
    %c2_23 = arith.constant 2 : index
    %c0_24 = arith.constant 0 : index
    %51 = vector.load %arg2[%c2_23, %c0_24] : memref<9x256xf32, #tpu.memory_space<vmem>>, vector<1x256xf32>
    %52 = vector.broadcast %51 : vector<1x256xf32> to vector<8x256xf32>
    %53 = arith.mulf %50, %52 : vector<8x256xf32>
    %c1_i32_25 = arith.constant 1 : i32
    %54 = tpu.dynamic_rotate %41 by %c1_i32_25 dim 1 : vector<8x256xf32>, i32 -> vector<8x256xf32>
    %c3_26 = arith.constant 3 : index
    %c0_27 = arith.constant 0 : index
    %55 = vector.load %arg2[%c3_26, %c0_27] : memref<9x256xf32, #tpu.memory_space<vmem>>, vector<1x256xf32>
    %56 = vector.broadcast %55 : vector<1x256xf32> to vector<8x256xf32>
    %57 = arith.mulf %54, %56 : vector<8x256xf32>
    %c255_i32_28 = arith.constant 255 : i32
    %58 = tpu.dynamic_rotate %41 by %c255_i32_28 dim 1 : vector<8x256xf32>, i32 -> vector<8x256xf32>
    %c5_29 = arith.constant 5 : index
    %c0_30 = arith.constant 0 : index
    %59 = vector.load %arg2[%c5_29, %c0_30] : memref<9x256xf32, #tpu.memory_space<vmem>>, vector<1x256xf32>
    %60 = vector.broadcast %59 : vector<1x256xf32> to vector<8x256xf32>
    %61 = arith.mulf %58, %60 : vector<8x256xf32>
    %c241_i32_31 = arith.constant 241 : i32
    %62 = tpu.dynamic_rotate %41 by %c241_i32_31 dim 1 : vector<8x256xf32>, i32 -> vector<8x256xf32>
    %c6_32 = arith.constant 6 : index
    %c0_33 = arith.constant 0 : index
    %63 = vector.load %arg2[%c6_32, %c0_33] : memref<9x256xf32, #tpu.memory_space<vmem>>, vector<1x256xf32>
    %64 = vector.broadcast %63 : vector<1x256xf32> to vector<8x256xf32>
    %65 = arith.mulf %62, %64 : vector<8x256xf32>
    %c240_i32_34 = arith.constant 240 : i32
    %66 = tpu.dynamic_rotate %41 by %c240_i32_34 dim 1 : vector<8x256xf32>, i32 -> vector<8x256xf32>
    %c7_35 = arith.constant 7 : index
    %c0_36 = arith.constant 0 : index
    %67 = vector.load %arg2[%c7_35, %c0_36] : memref<9x256xf32, #tpu.memory_space<vmem>>, vector<1x256xf32>
    %68 = vector.broadcast %67 : vector<1x256xf32> to vector<8x256xf32>
    %69 = arith.mulf %66, %68 : vector<8x256xf32>
    %c239_i32_37 = arith.constant 239 : i32
    %70 = tpu.dynamic_rotate %41 by %c239_i32_37 dim 1 : vector<8x256xf32>, i32 -> vector<8x256xf32>
    %c8_38 = arith.constant 8 : index
    %c0_39 = arith.constant 0 : index
    %71 = vector.load %arg2[%c8_38, %c0_39] : memref<9x256xf32, #tpu.memory_space<vmem>>, vector<1x256xf32>
    %72 = vector.broadcast %71 : vector<1x256xf32> to vector<8x256xf32>
    %73 = arith.mulf %70, %72 : vector<8x256xf32>
    %74 = tpu.concatenate %45, %49, %53, %57, %41, %61, %65, %69, %73 in 0 : vector<8x256xf32>, vector<8x256xf32>, vector<8x256xf32>, vector<8x256xf32>, vector<8x256xf32>, vector<8x256xf32>, vector<8x256xf32>, vector<8x256xf32>, vector<8x256xf32> -> vector<72x256xf32>
    %c8_40 = arith.constant 8 : index
    %c0_41 = arith.constant 0 : index
    %75 = vector.load %arg3[%c8_40, %c0_41] : memref<72x72xf32, #tpu.memory_space<vmem>>, vector<8x72xf32>
    %cst_42 = arith.constant dense<0.000000e+00> : vector<8x256xf32>
    %76 = tpu.matmul %75, %74, %cst_42 {dimension_numbers = #tpu.dot_dimension_numbers<[1], [0], [0], [1], [0, 0, 1, 1], [], []>} : vector<8x72xf32>, vector<72x256xf32>, vector<8x256xf32> -> vector<8x256xf32>
    %c8_43 = arith.constant 8 : index
    %c0_44 = arith.constant 0 : index
    %77 = vector.load %arg4[%c8_43, %c0_44] : memref<72x1xf32, #tpu.memory_space<vmem>>, vector<8x1xf32>
    %78 = vector.broadcast %77 : vector<8x1xf32> to vector<8x256xf32>
    %79 = arith.addf %76, %78 : vector<8x256xf32>
    %cst_45 = arith.constant dense<0.000000e+00> : vector<8xf32>
    %80 = vector.multi_reduction <add>, %79, %cst_45 [1] : vector<8x256xf32> to vector<8xf32>
    %81 = vector.shape_cast %80 : vector<8xf32> to vector<8x1xf32>
    %cst_46 = arith.constant 2.560000e+02 : f32
    %82 = vector.broadcast %cst_46 : f32 to vector<8x1xf32>
    %83 = arith.divf %81, %82 : vector<8x1xf32>
    %cst_47 = arith.constant dense<0xFF800000> : vector<8xf32>
    %84 = vector.multi_reduction <maximumf>, %79, %cst_47 [1] : vector<8x256xf32> to vector<8xf32>
    %85 = vector.shape_cast %84 : vector<8xf32> to vector<8x1xf32>
    %86 = tpu.concatenate %83, %85 in 1 : vector<8x1xf32>, vector<8x1xf32> -> vector<8x2xf32>
    %c16 = arith.constant 16 : index
    %c0_48 = arith.constant 0 : index
    %87 = vector.load %arg3[%c16, %c0_48] : memref<72x72xf32, #tpu.memory_space<vmem>>, vector<8x8xf32>
    %cst_49 = arith.constant dense<0.000000e+00> : vector<8x2xf32>
    %88 = tpu.matmul %87, %86, %cst_49 {dimension_numbers = #tpu.dot_dimension_numbers<[1], [0], [0], [1], [0, 0, 1, 1], [], []>} : vector<8x8xf32>, vector<8x2xf32>, vector<8x2xf32> -> vector<8x2xf32>
    %c16_50 = arith.constant 16 : index
    %c0_51 = arith.constant 0 : index
    %89 = vector.load %arg4[%c16_50, %c0_51] : memref<72x1xf32, #tpu.memory_space<vmem>>, vector<8x1xf32>
    %90 = vector.broadcast %89 : vector<8x1xf32> to vector<8x2xf32>
    %91 = arith.addf %88, %90 : vector<8x2xf32>
    %cst_52 = arith.constant 0.000000e+00 : f32
    %92 = vector.broadcast %cst_52 : f32 to vector<8x2xf32>
    %93 = arith.maximumf %91, %92 : vector<8x2xf32>
    %c24 = arith.constant 24 : index
    %c0_53 = arith.constant 0 : index
    %94 = vector.load %arg3[%c24, %c0_53] : memref<72x72xf32, #tpu.memory_space<vmem>>, vector<8x8xf32>
    %cst_54 = arith.constant dense<0.000000e+00> : vector<8x2xf32>
    %95 = tpu.matmul %94, %93, %cst_54 {dimension_numbers = #tpu.dot_dimension_numbers<[1], [0], [0], [1], [0, 0, 1, 1], [], []>} : vector<8x8xf32>, vector<8x2xf32>, vector<8x2xf32> -> vector<8x2xf32>
    %c24_55 = arith.constant 24 : index
    %c0_56 = arith.constant 0 : index
    %96 = vector.load %arg4[%c24_55, %c0_56] : memref<72x1xf32, #tpu.memory_space<vmem>>, vector<8x1xf32>
    %97 = vector.broadcast %96 : vector<8x1xf32> to vector<8x2xf32>
    %98 = arith.addf %95, %97 : vector<8x2xf32>
    %99 = vector.extract_strided_slice %98 {offsets = [0, 0], sizes = [8, 1], strides = [1, 1]} : vector<8x2xf32> to vector<8x1xf32>
    %100 = vector.extract_strided_slice %98 {offsets = [0, 1], sizes = [8, 1], strides = [1, 1]} : vector<8x2xf32> to vector<8x1xf32>
    %101 = arith.mulf %99, %100 : vector<8x1xf32>
    %102 = arith.negf %101 : vector<8x1xf32>
    %103 = math.exp %102 : vector<8x1xf32>
    %cst_57 = arith.constant 1.000000e+00 : f32
    %104 = vector.broadcast %cst_57 : f32 to vector<8x1xf32>
    %105 = arith.addf %104, %103 : vector<8x1xf32>
    %106 = arith.divf %104, %105 : vector<8x1xf32>
    %107 = vector.broadcast %106 : vector<8x1xf32> to vector<8x256xf32>
    %108 = arith.mulf %79, %107 : vector<8x256xf32>
    %c17_i32_58 = arith.constant 17 : i32
    %109 = tpu.dynamic_rotate %108 by %c17_i32_58 dim 1 : vector<8x256xf32>, i32 -> vector<8x256xf32>
    %c0_59 = arith.constant 0 : index
    %c0_60 = arith.constant 0 : index
    %110 = vector.load %arg2[%c0_59, %c0_60] : memref<9x256xf32, #tpu.memory_space<vmem>>, vector<1x256xf32>
    %111 = vector.broadcast %110 : vector<1x256xf32> to vector<8x256xf32>
    %112 = arith.mulf %109, %111 : vector<8x256xf32>
    %c16_i32_61 = arith.constant 16 : i32
    %113 = tpu.dynamic_rotate %108 by %c16_i32_61 dim 1 : vector<8x256xf32>, i32 -> vector<8x256xf32>
    %c1_62 = arith.constant 1 : index
    %c0_63 = arith.constant 0 : index
    %114 = vector.load %arg2[%c1_62, %c0_63] : memref<9x256xf32, #tpu.memory_space<vmem>>, vector<1x256xf32>
    %115 = vector.broadcast %114 : vector<1x256xf32> to vector<8x256xf32>
    %116 = arith.mulf %113, %115 : vector<8x256xf32>
    %c15_i32_64 = arith.constant 15 : i32
    %117 = tpu.dynamic_rotate %108 by %c15_i32_64 dim 1 : vector<8x256xf32>, i32 -> vector<8x256xf32>
    %c2_65 = arith.constant 2 : index
    %c0_66 = arith.constant 0 : index
    %118 = vector.load %arg2[%c2_65, %c0_66] : memref<9x256xf32, #tpu.memory_space<vmem>>, vector<1x256xf32>
    %119 = vector.broadcast %118 : vector<1x256xf32> to vector<8x256xf32>
    %120 = arith.mulf %117, %119 : vector<8x256xf32>
    %c1_i32_67 = arith.constant 1 : i32
    %121 = tpu.dynamic_rotate %108 by %c1_i32_67 dim 1 : vector<8x256xf32>, i32 -> vector<8x256xf32>
    %c3_68 = arith.constant 3 : index
    %c0_69 = arith.constant 0 : index
    %122 = vector.load %arg2[%c3_68, %c0_69] : memref<9x256xf32, #tpu.memory_space<vmem>>, vector<1x256xf32>
    %123 = vector.broadcast %122 : vector<1x256xf32> to vector<8x256xf32>
    %124 = arith.mulf %121, %123 : vector<8x256xf32>
    %c255_i32_70 = arith.constant 255 : i32
    %125 = tpu.dynamic_rotate %108 by %c255_i32_70 dim 1 : vector<8x256xf32>, i32 -> vector<8x256xf32>
    %c5_71 = arith.constant 5 : index
    %c0_72 = arith.constant 0 : index
    %126 = vector.load %arg2[%c5_71, %c0_72] : memref<9x256xf32, #tpu.memory_space<vmem>>, vector<1x256xf32>
    %127 = vector.broadcast %126 : vector<1x256xf32> to vector<8x256xf32>
    %128 = arith.mulf %125, %127 : vector<8x256xf32>
    %c241_i32_73 = arith.constant 241 : i32
    %129 = tpu.dynamic_rotate %108 by %c241_i32_73 dim 1 : vector<8x256xf32>, i32 -> vector<8x256xf32>
    %c6_74 = arith.constant 6 : index
    %c0_75 = arith.constant 0 : index
    %130 = vector.load %arg2[%c6_74, %c0_75] : memref<9x256xf32, #tpu.memory_space<vmem>>, vector<1x256xf32>
    %131 = vector.broadcast %130 : vector<1x256xf32> to vector<8x256xf32>
    %132 = arith.mulf %129, %131 : vector<8x256xf32>
    %c240_i32_76 = arith.constant 240 : i32
    %133 = tpu.dynamic_rotate %108 by %c240_i32_76 dim 1 : vector<8x256xf32>, i32 -> vector<8x256xf32>
    %c7_77 = arith.constant 7 : index
    %c0_78 = arith.constant 0 : index
    %134 = vector.load %arg2[%c7_77, %c0_78] : memref<9x256xf32, #tpu.memory_space<vmem>>, vector<1x256xf32>
    %135 = vector.broadcast %134 : vector<1x256xf32> to vector<8x256xf32>
    %136 = arith.mulf %133, %135 : vector<8x256xf32>
    %c239_i32_79 = arith.constant 239 : i32
    %137 = tpu.dynamic_rotate %108 by %c239_i32_79 dim 1 : vector<8x256xf32>, i32 -> vector<8x256xf32>
    %c8_80 = arith.constant 8 : index
    %c0_81 = arith.constant 0 : index
    %138 = vector.load %arg2[%c8_80, %c0_81] : memref<9x256xf32, #tpu.memory_space<vmem>>, vector<1x256xf32>
    %139 = vector.broadcast %138 : vector<1x256xf32> to vector<8x256xf32>
    %140 = arith.mulf %137, %139 : vector<8x256xf32>
    %141 = tpu.concatenate %112, %116, %120, %124, %108, %128, %132, %136, %140 in 0 : vector<8x256xf32>, vector<8x256xf32>, vector<8x256xf32>, vector<8x256xf32>, vector<8x256xf32>, vector<8x256xf32>, vector<8x256xf32>, vector<8x256xf32>, vector<8x256xf32> -> vector<72x256xf32>
    %c32 = arith.constant 32 : index
    %c0_82 = arith.constant 0 : index
    %142 = vector.load %arg3[%c32, %c0_82] : memref<72x72xf32, #tpu.memory_space<vmem>>, vector<8x72xf32>
    %cst_83 = arith.constant dense<0.000000e+00> : vector<8x256xf32>
    %143 = tpu.matmul %142, %141, %cst_83 {dimension_numbers = #tpu.dot_dimension_numbers<[1], [0], [0], [1], [0, 0, 1, 1], [], []>} : vector<8x72xf32>, vector<72x256xf32>, vector<8x256xf32> -> vector<8x256xf32>
    %c32_84 = arith.constant 32 : index
    %c0_85 = arith.constant 0 : index
    %144 = vector.load %arg4[%c32_84, %c0_85] : memref<72x1xf32, #tpu.memory_space<vmem>>, vector<8x1xf32>
    %145 = vector.broadcast %144 : vector<8x1xf32> to vector<8x256xf32>
    %146 = arith.addf %143, %145 : vector<8x256xf32>
    %cst_86 = arith.constant 0.000000e+00 : f32
    %147 = vector.broadcast %cst_86 : f32 to vector<8x256xf32>
    %148 = arith.maximumf %146, %147 : vector<8x256xf32>
    %c17_i32_87 = arith.constant 17 : i32
    %149 = tpu.dynamic_rotate %148 by %c17_i32_87 dim 1 : vector<8x256xf32>, i32 -> vector<8x256xf32>
    %c0_88 = arith.constant 0 : index
    %c0_89 = arith.constant 0 : index
    %150 = vector.load %arg2[%c0_88, %c0_89] : memref<9x256xf32, #tpu.memory_space<vmem>>, vector<1x256xf32>
    %151 = vector.broadcast %150 : vector<1x256xf32> to vector<8x256xf32>
    %152 = arith.mulf %149, %151 : vector<8x256xf32>
    %c16_i32_90 = arith.constant 16 : i32
    %153 = tpu.dynamic_rotate %148 by %c16_i32_90 dim 1 : vector<8x256xf32>, i32 -> vector<8x256xf32>
    %c1_91 = arith.constant 1 : index
    %c0_92 = arith.constant 0 : index
    %154 = vector.load %arg2[%c1_91, %c0_92] : memref<9x256xf32, #tpu.memory_space<vmem>>, vector<1x256xf32>
    %155 = vector.broadcast %154 : vector<1x256xf32> to vector<8x256xf32>
    %156 = arith.mulf %153, %155 : vector<8x256xf32>
    %c15_i32_93 = arith.constant 15 : i32
    %157 = tpu.dynamic_rotate %148 by %c15_i32_93 dim 1 : vector<8x256xf32>, i32 -> vector<8x256xf32>
    %c2_94 = arith.constant 2 : index
    %c0_95 = arith.constant 0 : index
    %158 = vector.load %arg2[%c2_94, %c0_95] : memref<9x256xf32, #tpu.memory_space<vmem>>, vector<1x256xf32>
    %159 = vector.broadcast %158 : vector<1x256xf32> to vector<8x256xf32>
    %160 = arith.mulf %157, %159 : vector<8x256xf32>
    %c1_i32_96 = arith.constant 1 : i32
    %161 = tpu.dynamic_rotate %148 by %c1_i32_96 dim 1 : vector<8x256xf32>, i32 -> vector<8x256xf32>
    %c3_97 = arith.constant 3 : index
    %c0_98 = arith.constant 0 : index
    %162 = vector.load %arg2[%c3_97, %c0_98] : memref<9x256xf32, #tpu.memory_space<vmem>>, vector<1x256xf32>
    %163 = vector.broadcast %162 : vector<1x256xf32> to vector<8x256xf32>
    %164 = arith.mulf %161, %163 : vector<8x256xf32>
    %c255_i32_99 = arith.constant 255 : i32
    %165 = tpu.dynamic_rotate %148 by %c255_i32_99 dim 1 : vector<8x256xf32>, i32 -> vector<8x256xf32>
    %c5_100 = arith.constant 5 : index
    %c0_101 = arith.constant 0 : index
    %166 = vector.load %arg2[%c5_100, %c0_101] : memref<9x256xf32, #tpu.memory_space<vmem>>, vector<1x256xf32>
    %167 = vector.broadcast %166 : vector<1x256xf32> to vector<8x256xf32>
    %168 = arith.mulf %165, %167 : vector<8x256xf32>
    %c241_i32_102 = arith.constant 241 : i32
    %169 = tpu.dynamic_rotate %148 by %c241_i32_102 dim 1 : vector<8x256xf32>, i32 -> vector<8x256xf32>
    %c6_103 = arith.constant 6 : index
    %c0_104 = arith.constant 0 : index
    %170 = vector.load %arg2[%c6_103, %c0_104] : memref<9x256xf32, #tpu.memory_space<vmem>>, vector<1x256xf32>
    %171 = vector.broadcast %170 : vector<1x256xf32> to vector<8x256xf32>
    %172 = arith.mulf %169, %171 : vector<8x256xf32>
    %c240_i32_105 = arith.constant 240 : i32
    %173 = tpu.dynamic_rotate %148 by %c240_i32_105 dim 1 : vector<8x256xf32>, i32 -> vector<8x256xf32>
    %c7_106 = arith.constant 7 : index
    %c0_107 = arith.constant 0 : index
    %174 = vector.load %arg2[%c7_106, %c0_107] : memref<9x256xf32, #tpu.memory_space<vmem>>, vector<1x256xf32>
    %175 = vector.broadcast %174 : vector<1x256xf32> to vector<8x256xf32>
    %176 = arith.mulf %173, %175 : vector<8x256xf32>
    %c239_i32_108 = arith.constant 239 : i32
    %177 = tpu.dynamic_rotate %148 by %c239_i32_108 dim 1 : vector<8x256xf32>, i32 -> vector<8x256xf32>
    %c8_109 = arith.constant 8 : index
    %c0_110 = arith.constant 0 : index
    %178 = vector.load %arg2[%c8_109, %c0_110] : memref<9x256xf32, #tpu.memory_space<vmem>>, vector<1x256xf32>
    %179 = vector.broadcast %178 : vector<1x256xf32> to vector<8x256xf32>
    %180 = arith.mulf %177, %179 : vector<8x256xf32>
    %181 = tpu.concatenate %152, %156, %160, %164, %148, %168, %172, %176, %180 in 0 : vector<8x256xf32>, vector<8x256xf32>, vector<8x256xf32>, vector<8x256xf32>, vector<8x256xf32>, vector<8x256xf32>, vector<8x256xf32>, vector<8x256xf32>, vector<8x256xf32> -> vector<72x256xf32>
    %c40 = arith.constant 40 : index
    %c0_111 = arith.constant 0 : index
    %182 = vector.load %arg3[%c40, %c0_111] : memref<72x72xf32, #tpu.memory_space<vmem>>, vector<8x72xf32>
    %cst_112 = arith.constant dense<0.000000e+00> : vector<8x256xf32>
    %183 = tpu.matmul %182, %181, %cst_112 {dimension_numbers = #tpu.dot_dimension_numbers<[1], [0], [0], [1], [0, 0, 1, 1], [], []>} : vector<8x72xf32>, vector<72x256xf32>, vector<8x256xf32> -> vector<8x256xf32>
    %c40_113 = arith.constant 40 : index
    %c0_114 = arith.constant 0 : index
    %184 = vector.load %arg4[%c40_113, %c0_114] : memref<72x1xf32, #tpu.memory_space<vmem>>, vector<8x1xf32>
    %185 = vector.broadcast %184 : vector<8x1xf32> to vector<8x256xf32>
    %186 = arith.addf %183, %185 : vector<8x256xf32>
    %cst_115 = arith.constant dense<0.000000e+00> : vector<8xf32>
    %187 = vector.multi_reduction <add>, %186, %cst_115 [1] : vector<8x256xf32> to vector<8xf32>
    %188 = vector.shape_cast %187 : vector<8xf32> to vector<8x1xf32>
    %cst_116 = arith.constant 2.560000e+02 : f32
    %189 = vector.broadcast %cst_116 : f32 to vector<8x1xf32>
    %190 = arith.divf %188, %189 : vector<8x1xf32>
    %cst_117 = arith.constant dense<0xFF800000> : vector<8xf32>
    %191 = vector.multi_reduction <maximumf>, %186, %cst_117 [1] : vector<8x256xf32> to vector<8xf32>
    %192 = vector.shape_cast %191 : vector<8xf32> to vector<8x1xf32>
    %193 = tpu.concatenate %190, %192 in 1 : vector<8x1xf32>, vector<8x1xf32> -> vector<8x2xf32>
    %c48 = arith.constant 48 : index
    %c0_118 = arith.constant 0 : index
    %194 = vector.load %arg3[%c48, %c0_118] : memref<72x72xf32, #tpu.memory_space<vmem>>, vector<8x8xf32>
    %cst_119 = arith.constant dense<0.000000e+00> : vector<8x2xf32>
    %195 = tpu.matmul %194, %193, %cst_119 {dimension_numbers = #tpu.dot_dimension_numbers<[1], [0], [0], [1], [0, 0, 1, 1], [], []>} : vector<8x8xf32>, vector<8x2xf32>, vector<8x2xf32> -> vector<8x2xf32>
    %c48_120 = arith.constant 48 : index
    %c0_121 = arith.constant 0 : index
    %196 = vector.load %arg4[%c48_120, %c0_121] : memref<72x1xf32, #tpu.memory_space<vmem>>, vector<8x1xf32>
    %197 = vector.broadcast %196 : vector<8x1xf32> to vector<8x2xf32>
    %198 = arith.addf %195, %197 : vector<8x2xf32>
    %cst_122 = arith.constant 0.000000e+00 : f32
    %199 = vector.broadcast %cst_122 : f32 to vector<8x2xf32>
    %200 = arith.maximumf %198, %199 : vector<8x2xf32>
    %c56 = arith.constant 56 : index
    %c0_123 = arith.constant 0 : index
    %201 = vector.load %arg3[%c56, %c0_123] : memref<72x72xf32, #tpu.memory_space<vmem>>, vector<8x8xf32>
    %cst_124 = arith.constant dense<0.000000e+00> : vector<8x2xf32>
    %202 = tpu.matmul %201, %200, %cst_124 {dimension_numbers = #tpu.dot_dimension_numbers<[1], [0], [0], [1], [0, 0, 1, 1], [], []>} : vector<8x8xf32>, vector<8x2xf32>, vector<8x2xf32> -> vector<8x2xf32>
    %c56_125 = arith.constant 56 : index
    %c0_126 = arith.constant 0 : index
    %203 = vector.load %arg4[%c56_125, %c0_126] : memref<72x1xf32, #tpu.memory_space<vmem>>, vector<8x1xf32>
    %204 = vector.broadcast %203 : vector<8x1xf32> to vector<8x2xf32>
    %205 = arith.addf %202, %204 : vector<8x2xf32>
    %206 = vector.extract_strided_slice %205 {offsets = [0, 0], sizes = [8, 1], strides = [1, 1]} : vector<8x2xf32> to vector<8x1xf32>
    %207 = vector.extract_strided_slice %205 {offsets = [0, 1], sizes = [8, 1], strides = [1, 1]} : vector<8x2xf32> to vector<8x1xf32>
    %208 = arith.mulf %206, %207 : vector<8x1xf32>
    %209 = arith.negf %208 : vector<8x1xf32>
    %210 = math.exp %209 : vector<8x1xf32>
    %cst_127 = arith.constant 1.000000e+00 : f32
    %211 = vector.broadcast %cst_127 : f32 to vector<8x1xf32>
    %212 = arith.addf %211, %210 : vector<8x1xf32>
    %213 = arith.divf %211, %212 : vector<8x1xf32>
    %214 = vector.broadcast %213 : vector<8x1xf32> to vector<8x256xf32>
    %215 = arith.mulf %186, %214 : vector<8x256xf32>
    %216 = tpu.concatenate %108, %215 in 0 : vector<8x256xf32>, vector<8x256xf32> -> vector<16x256xf32>
    %c64 = arith.constant 64 : index
    %c0_128 = arith.constant 0 : index
    %217 = vector.load %arg3[%c64, %c0_128] : memref<72x72xf32, #tpu.memory_space<vmem>>, vector<8x16xf32>
    %cst_129 = arith.constant dense<0.000000e+00> : vector<8x256xf32>
    %218 = tpu.matmul %217, %216, %cst_129 {dimension_numbers = #tpu.dot_dimension_numbers<[1], [0], [0], [1], [0, 0, 1, 1], [], []>} : vector<8x16xf32>, vector<16x256xf32>, vector<8x256xf32> -> vector<8x256xf32>
    %c64_130 = arith.constant 64 : index
    %c0_131 = arith.constant 0 : index
    %219 = vector.load %arg4[%c64_130, %c0_131] : memref<72x1xf32, #tpu.memory_space<vmem>>, vector<8x1xf32>
    %220 = vector.broadcast %219 : vector<8x1xf32> to vector<8x256xf32>
    %221 = arith.addf %218, %220 : vector<8x256xf32>
    %c0_132 = arith.constant 0 : index
    %c0_133 = arith.constant 0 : index
    %c0_134 = arith.constant 0 : index
    %222 = vector.load %arg5[%c0_132, %c0_133, %c0_134] : memref<1x8x256xf32, #tpu.memory_space<vmem>>, vector<1x8x256xf32>
    %223 = vector.shape_cast %222 : vector<1x8x256xf32> to vector<8x256xf32>
    %224 = vector.shape_cast %221 : vector<8x256xf32> to vector<1x8x256xf32>
    tpu.vector_store %arg5[%c0_132, %c0_133, %c0_134], %224 {strides = array<i32>} : memref<1x8x256xf32, #tpu.memory_space<vmem>>, vector<1x8x256xf32>,
    return
  }
  func.func @transform_0(%arg0: i32) -> (i32, i32, i32) {
    %c0_i32 = arith.constant 0 : i32
    %c0_i32_0 = arith.constant 0 : i32
    %c0_i32_1 = arith.constant 0 : i32
    return %arg0, %c0_i32, %c0_i32_0 : i32, i32, i32
  }
  func.func @transform_1(%arg0: i32) -> (i32, i32) {
    %c0_i32 = arith.constant 0 : i32
    %c0_i32_0 = arith.constant 0 : i32
    %c0_i32_1 = arith.constant 0 : i32
    return %c0_i32, %c0_i32_0 : i32, i32
  }
  func.func @transform_2(%arg0: i32) -> (i32, i32) {
    %c0_i32 = arith.constant 0 : i32
    %c0_i32_0 = arith.constant 0 : i32
    %c0_i32_1 = arith.constant 0 : i32
    return %c0_i32, %c0_i32_0 : i32, i32
  }
  func.func @transform_3(%arg0: i32) -> (i32, i32) {
    %c0_i32 = arith.constant 0 : i32
    %c0_i32_0 = arith.constant 0 : i32
    %c0_i32_1 = arith.constant 0 : i32
    return %c0_i32, %c0_i32_0 : i32, i32
  }
  func.func @transform_4(%arg0: i32) -> (i32, i32, i32) {
    %c0_i32 = arith.constant 0 : i32
    %c0_i32_0 = arith.constant 0 : i32
    %c0_i32_1 = arith.constant 0 : i32
    return %arg0, %c0_i32, %c0_i32_0 : i32, i32, i32
  }
}

</mosaic_0001>

<bundles_post_ra>
// kernel: tpu_custom_call.1
= control target key start
LH: loop header
LB: loop body
LE: loop exit
PB: predicated region body
PF: predicated region fallthrough
CT: control target
= control target key end

     0   :  { %9 = vsyncpa [#allocation3], 0  ;;  %s1974_s0 = inlined_call_operand.hbm [shape: f32[2,8,256], index: 0, kind: input, shape index: {}]   ;;  %s1975_s1 = inlined_call_operand.hbm [shape: f32[9,256], index: 1, kind: input, shape index: {}]   ;;  %s1976_s2 = inlined_call_operand.vmem [shape: f32[72,72], index: 2, kind: input, shape index: {}]   ;;  %s1977_s3 = inlined_call_operand.vmem [shape: f32[72,1], index: 3, kind: input, shape index: {}]   ;;  %s1978_s4 = inlined_call_operand.hbm [shape: f32[2,8,256], index: 4, kind: output, shape index: {}]  }
   0x1   :  { %11 = vsyncpa [#allocation3 + $0x1], 0 }
   0x2   :  { %12 = vsyncpa [#allocation6], 0 }
   0x3   :  { %13 = vsyncpa [#allocation4], 0 }
   0x4   :  { %15 = vsyncpa [#allocation4 + $0x1], 0  ;;  %s1405_s15 = smov 0   ;;  %s1407_s16 = smov 0  }
   0x5   :  { %s1409_s17 = smov 0   ;;  %s1411_s18 = smov 0  }
   0x6 LB: > { %s152_s21 = sshll.u32 %s1975_s1, 4  ;;  %s1429_s22 = sadd.s32 4294967295, %s1365_s18   ;;  %s1365_s18 = sphi %s1411_s18, %s1988_s18   ;;  %s1361_s17 = sphi %s1409_s17, %s1987_s17   ;;  %s1357_s16 = sphi %s1407_s16, %s1986_s16   ;;  %s1353_s15 = sphi %s1405_s15, %s1985_s15   ;;  %s153_s21 = int_to_ptr.hbm [resolvable:$true] %s152_s21 }
   0x7   : > { %p1121_p0 = scmp.ge.s32.totalorder %s1365_s18, 1  ;;  %p42_p1 = scmp.eq.s32.totalorder %s1429_s22, 0 }
   0x8   : > { %p141_p2 = scmp.lt.s32.totalorder %s1365_s18, 3  ;;  %s1367_s24 = smov [#allocation5]  }
   0x9   : > { %s154_s25 = sshll.u32 %s1367_s24, 4  ;;  %s1368_s26 = smov 256   ;;  %s155_s25 = int_to_ptr.vmem [resolvable:$true] %s154_s25 }
   0xa   : > { %p1434_p3 = pnand %p1121_p0, %p141_p2  ;;  %s1369_s27 = smov 16  }
   0xb   : > { %s1120_s28 = sadd.s32 4294967294, %s1365_s18   ;;  %s1445_s29 = sadd.s32 1, %s1365_s18  }
   0xc   : > { %p1162_p4 = pneg %p1434_p3  ;;  %s28_s30 = sadd.s32 1, %s1361_s17 }
   0xd   : > { %s25_s5 = ssub.s32 %s1365_s18, %s1445_s29  ;;  %p35_p7 = scmp.ne.s32.totalorder %s1361_s17, %s1357_s16 }
   0xe   : > { %p1163_p6 = pnand %p1162_p4, %p42_p1  ;;  %p26_p8 = scmp.eq.s32.totalorder %s25_s5, 0 }
   0xf   : > { %p36_p9 = scmp.eq.s32.totalorder %s1365_s18, 0  ;;  %p41_p10 = scmp.ne.s32.totalorder %s1357_s16, %s1353_s15 }
  0x10   : > { %1165 = dma.hbm_to_vmem [thread:$0]  (!%p1163_p6), %s153_s21, 512, %s155_s25, [#allocation6], %s1368_s26, %s1368_s26, %s1369_s27  }
  0x11   : > { %p128_p11 = scmp.eq.s32.totalorder %s1429_s22, 1  ;;  %p1461_p12 = por %p42_p1, %p41_p10 }
  0x12   : > { %s1457_s6 = scalar_select %p26_p8, %s1361_s17, %s28_s30  }
  0x13   : > { %p1465_p13 = por %p128_p11, %p35_p7  ;;  %p134_p0 = scmp.eq.s32.totalorder %s1120_s28, 1 }
  0x14   : > { %p37_p2 = por %p36_p9, %p35_p7  ;;  %s174_s9 = sand.u32 1, %s1361_s17  }
  0x15   : > { %p1470_p4 = por %p134_p0, %p41_p10  ;;  %p1175_p6 = scmp.lt.s32.totalorder %s1365_s18, 2 }
  0x16   : > { %s1124_s11 = sshll.u32 %s174_s9, 4  ;;  %s1152_s12 = sshll.u32 %s1365_s18, 4 }
  0x17   : > { %s183_s19 = scalar_lea.hbm %s1974_s0, %s1152_s12  ;;  %s178_s21 = scalar_lea.vmem [#allocation2], %s1124_s11 }
  0x18   : > { %s185_s20 = sshll.u32 %s183_s19, 4  ;;  %s187_s24 = sshll.u32 %s178_s21, 4  ;;  %s186_s20 = int_to_ptr.hbm [resolvable:$true] %s185_s20  ;;  %s188_s24 = int_to_ptr.vmem [resolvable:$true] %s187_s24 }
  0x19   : > { %p1479_p8 = pnand %p1175_p6, %p37_p2  ;;  %s175_s26 = scalar_lea.sflag [#allocation3], %s174_s9 }
  0x1a   : > { %s1265_s27 = sshra.s32 %s186_s20, 4  ;;  %s1272_s11 = scalar_lea.hbm %s1974_s0, 32  ;;  %s1266_s27 = int_to_ptr.hbm [resolvable:$true] %s1265_s27 }
  0x1b   : > { %s1267_s28 = scalar_lea.hbm %s1266_s27, 16  ;;  %p1269_p9 = pneg %p1479_p8 }
  0x1c   : > { %p1268_p7 = scmp.ne.s32.totalorder %s1266_s27, %s1267_s28  ;;  %p1273_p0 = scmp.lt.s32.totalorder %s1266_s27, %s1974_s0 }
  0x1d   : > { %p1274_p2 = scmp.lt.s32.totalorder %s1272_s11, %s1267_s28 }
  0x1e   : > { %p1270_p10 = pnand %p1269_p9, %p1268_p7 }
  0x1f   : > { %p1275_p6 = por %p1274_p2, %p1273_p0 }
  0x20   : > { %p1271_p11 = pneg %p1270_p10 }
  0x22   : > { %p1276_p5 = pnand %p1275_p6, %p1271_p11 }
  0x24   : > { %1279 = shalt.err (!%p1276_p5)
}
  0x25   : > { %1169 = dma.hbm_to_vmem [thread:$0]  (!%p1479_p8), %s186_s20, 256, %s188_s24, %s175_s26  }
  0x26   : > { %196 = sbr.rel (%p1434_p3) target bundleno = 2636 (0xa4c), region = 36  ;;  %s1496_s9 = sand.u32 (!%p1434_p3), 1, %s1357_s16  }
  0x27   : > { %s1128_s14 = sshll.u32 (!%p1434_p3), %s1496_s9, 4  ;;  %s199_s19 = scalar_lea.sflag (!%p1434_p3), [#allocation3], %s1496_s9 }
  0x28   : > { %s202_s21 = scalar_lea.vmem (!%p1434_p3), [#allocation2], %s1128_s14 }
  0x2b   : > { %1340 = dma.done.wait (%p1461_p12), %s199_s19, 256  }
  0x2c   : > { %1342 = vsyncadd (%p1461_p12), %s199_s19, 4294967040 }
  0x2d   : > { %1344 = dma.done.wait (%p42_p1), [#allocation6], 512  }
  0x2e   : > { %1346 = vsyncadd (%p42_p1), [#allocation6], 4294966784  ;;  %v1510_v0 = vld [vmem:[%s202_s21] sm:$0xff]  ;;  %s1370_s23 = smov 112   ;;  %s1371_s20 = smov 111   ;;  %v1518_v1 = vld [vmem:[%s202_s21 + $0x8] sm:$0xff]  ;;  %v239_v3 = vlaneseq }
  0x2f   : > { %332 = vrot.lane.b32.xlu1 %v1510_v0, %s1370_s23  ;;  %348 = vrot.lane.b32.xlu0 %v1510_v0, %s1371_s20  ;;  %s1372_s24 = smov 113   ;;  %s1373_s7 = smov 127   ;;  %v356_v7 = vld [vmem:[#allocation5 + $0x10] ss:$8 sm:$0x3]  ;;  %v365_v35 = vld [vmem:[%s1977_s3] sm:$0xff] }
  0x30   : > { %316 = vrot.lane.b32.xlu2 %v1510_v0, %s1372_s24  ;;  %s1374_s25 = smov 1   ;;  %s1375_s26 = smov 15   ;;  %v1546_v6 = vand.u32 127, %v239_v3  ;;  %v340_v9 = vld [vmem:[#allocation5 + $0x7] ss:$8 sm:$0x3] }
  0x31   : > { %s1376_s27 = smov 16   ;;  %s1377_s28 = smov 17   ;;  %v1550_v10 = vperm.slane %v356_v7, 0  ;;  %v1552_v11 = vperm.slane %v356_v7, 1  ;;  %v1555_v15 = vperm.slane %v340_v9, 0  ;;  %v1557_v16 = vperm.slane %v340_v9, 1 }
  0x32   : > { %vm336_vm0 = vcmp.lt.s32.totalorder %v1546_v6, 112  ;;  %vm352_vm1 = vcmp.lt.s32.totalorder %v1546_v6, 111  ;;  %v324_v12 = vld [vmem:[#allocation5 + $0x6] ss:$8 sm:$0x3]  ;;  %vm320_vm2 = vcmp.lt.s32.totalorder %v1546_v6, 113 }
  0x33   : > { %v1569_v23 = vperm.slane %v324_v12, 0  ;;  %v1571_v24 = vperm.slane %v324_v12, 1  ;;  %v308_v27 = vld [vmem:[#allocation5 + $0x5] ss:$8 sm:$0x3]  ;;  %vm304_vm3 = vcmp.lt.s32.totalorder %v1546_v6, 127 }
  0x34   : > { %v1582_v33 = vperm.slane %v308_v27, 0  ;;  %v1584_v34 = vperm.slane %v308_v27, 1  ;;  %v1378_v36 = vmov 0   ;;  %v292_v43 = vld [vmem:[#allocation5 + $0x3] ss:$8 sm:$0x3] }
  0x35   : > { %1223 = vset.pattern.permute.xlu1 %v1378_v36  ;;  %1224 = vset.pattern.permute.xlu0 %v1378_v36  ;;  %v276_v44 = vld [vmem:[#allocation5 + $0x2] ss:$8 sm:$0x3]  ;;  %vm288_vm4 = vcmp.lt.s32.totalorder %v1546_v6, 1  ;;  %v1596_v45 = vperm.slane %v292_v43, 0  ;;  %v1600_v46 = vperm.slane %v292_v43, 1 }
  0x36   : > { %vm272_vm5 = vcmp.lt.s32.totalorder %v1546_v6, 15  ;;  %v1603_v48 = vperm.slane %v276_v44, 0  ;;  %v1605_v49 = vperm.slane %v276_v44, 1  ;;  %v260_v60 = vld [vmem:[#allocation5 + $0x1] ss:$8 sm:$0x3] }
  0x37   : > { %334 = vrot.lane.b32.xlu1 %v1518_v1, %s1370_s23  ;;  %350 = vrot.lane.b32.xlu0 %v1518_v1, %s1371_s20  ;;  %vm256_vm6 = vcmp.lt.s32.totalorder %v1546_v6, 16  ;;  %v1620_v61 = vperm.slane %v260_v60, 0  ;;  %v1622_v62 = vperm.slane %v260_v60, 1  ;;  %vm241_vm7 = vcmp.lt.s32.totalorder %v1546_v6, 17  ;;  %s232_s21 = scalar_lea.vmem [#allocation7], %s1128_s14  ;;  %s1024_s30 = scalar_lea.sflag [#allocation4], %s1496_s9 }
  0x38   : > { %318 = vrot.lane.b32.xlu2 %v1518_v1, %s1372_s24  ;;  %vm371_vm8 = vcmask 588800   ;;  %vm545_vm10 = vcmask 7168   ;;  %vm554_vm11 = vcmask 64512   ;;  %s1315_s12 = scalar_lea.hbm %s1978_s4, 32 }
  0x3f   : > { %302 = vrot.lane.b32.xlu1 %v1518_v1, %s1373_s7  ;;  %300 = vrot.lane.b32.xlu0 %v1510_v0, %s1373_s7 }
  0x40   : > { %284 = vrot.lane.b32.xlu2 %v1510_v0, %s1374_s25 }
  0x47   : > { %268 = vrot.lane.b32.xlu1 %v1510_v0, %s1375_s26  ;;  %286 = vrot.lane.b32.xlu0 %v1518_v1, %s1374_s25 }
  0x48   : > { %270 = vrot.lane.b32.xlu2 %v1518_v1, %s1375_s26 }
  0x4f   : > { %254 = vrot.lane.b32.xlu1 %v1518_v1, %s1376_s27  ;;  %252 = vrot.lane.b32.xlu0 %v1510_v0, %s1376_s27 }
  0x50   : > { %235 = vrot.lane.b32.xlu2 %v1510_v0, %s1377_s28 }
  0x57   : > { %237 = vrot.lane.b32.xlu0 %v1518_v1, %s1377_s28  ;;  %368 = vperm.xlu1 %1223, %v365_v35  }
  0x8a   : > { %v317_v2 = vpop.permute.xlu2 %316 }
  0x92   : > { %v319_v8 = vpop.permute.xlu2 %318 }
  0x93   : > { %v321_v25 = vsel %vm320_vm2, %v317_v2, %v319_v8  ;;  %v322_v26 = vsel %vm320_vm2, %v319_v8, %v317_v2 }
  0x94   : > { %v330_v31 = vmul.f32 %v1569_v23, %v321_v25  ;;  %v331_v32 = vmul.f32 %v1571_v24, %v322_v26 }
  0x9a   : > { %v285_v30 = vpop.permute.xlu2 %284 }
  0xa1   : > { %v333_v4 = vpop.permute.xlu1 %332  ;;  %v349_v5 = vpop.permute.xlu0 %348 }
  0xa2   : > { %v271_v47 = vpop.permute.xlu2 %270 }
  0xa9   : > { %v335_v13 = vpop.permute.xlu1 %334  ;;  %v351_v14 = vpop.permute.xlu0 %350 }
  0xaa   : > { %v337_v17 = vsel %vm336_vm0, %v333_v4, %v335_v13  ;;  %v338_v18 = vsel %vm336_vm0, %v335_v13, %v333_v4  ;;  %v353_v19 = vsel %vm352_vm1, %v349_v5, %v351_v14  ;;  %v354_v20 = vsel %vm352_vm1, %v351_v14, %v349_v5  ;;  %v244_v5 = vld [vmem:[#allocation5] ss:$8 sm:$0x3]  ;;  %v236_v7 = vpop.permute.xlu2 %235 }
  0xab   : > { %v362_v21 = vmul.f32 %v1550_v10, %v353_v19  ;;  %v363_v22 = vmul.f32 %v1552_v11, %v354_v20  ;;  %v346_v28 = vmul.f32 %v1555_v15, %v337_v17  ;;  %v347_v29 = vmul.f32 %v1557_v16, %v338_v18  ;;  %v364_v19 = vld [vmem:[%s1976_s2] sm:$0xff] }
  0xac   : > { %v1631_v8 = vperm.slane %v244_v5, 0  ;;  %v1633_v9 = vperm.slane %v244_v5, 1 }
  0xad   : > { %382 = vmatpush.msra.mxu0 %v362_v21  ;;  %402 = vmatpush.msra.mxu1 %v363_v22 }
  0xaf   : > { %383 = vmatpush.msra.mxu0 %v346_v28  ;;  %403 = vmatpush.msra.mxu1 %v347_v29 }
  0xb1   : > { %v303_v37 = vpop.permute.xlu1 %302  ;;  %384 = vmatpush.msra.mxu0 %v330_v31  ;;  %404 = vmatpush.msra.mxu1 %v331_v32  ;;  %v301_v38 = vpop.permute.xlu0 %300 }
  0xb2   : > { %v305_v39 = vsel %vm304_vm3, %v301_v38, %v303_v37  ;;  %v306_v40 = vsel %vm304_vm3, %v303_v37, %v301_v38 }
  0xb3   : > { %v314_v41 = vmul.f32 %v1582_v33, %v305_v39  ;;  %v315_v42 = vmul.f32 %v1584_v34, %v306_v40 }
  0xb5   : > { %385 = vmatpush.msra.mxu0 %v314_v41  ;;  %405 = vmatpush.msra.mxu1 %v315_v42 }
  0xb7   : > { %386 = vmatpush.msra.mxu0 %v1510_v0  ;;  %406 = vmatpush.msra.mxu1 %v1518_v1 }
  0xb9   : > { %v269_v50 = vpop.permute.xlu1 %268  ;;  %v287_v51 = vpop.permute.xlu0 %286 }
  0xba   : > { %v289_v52 = vsel %vm288_vm4, %v285_v30, %v287_v51  ;;  %v290_v53 = vsel %vm288_vm4, %v287_v51, %v285_v30  ;;  %v273_v54 = vsel %vm272_vm5, %v269_v50, %v271_v47  ;;  %v274_v55 = vsel %vm272_vm5, %v271_v47, %v269_v50  ;;  %v482_v47 = vld [vmem:[%s1977_s3 + $0x8] sm:$0xff] }
  0xbb   : > { %v298_v56 = vmul.f32 %v1596_v45, %v290_v53  ;;  %v299_v57 = vmul.f32 %v1600_v46, %v289_v52  ;;  %v282_v58 = vmul.f32 %v1603_v48, %v274_v55  ;;  %v283_v59 = vmul.f32 %v1605_v49, %v273_v54 }
  0xbd   : > { %387 = vmatpush.msra.mxu0 %v298_v56  ;;  %407 = vmatpush.msra.mxu1 %v299_v57  ;;  %v548_v56 = vld [vmem:[%s1977_s3 + $0x10] sm:$0xff] }
  0xbf   : > { %388 = vmatpush.msra.mxu0 %v282_v58  ;;  %408 = vmatpush.msra.mxu1 %v283_v59 }
  0xc1   : > { %v255_v63 = vpop.permute.xlu1 %254  ;;  %v253_v0 = vpop.permute.xlu0 %252 }
  0xc2   : > { %v257_v1 = vsel %vm256_vm6, %v253_v0, %v255_v63  ;;  %v258_v2 = vsel %vm256_vm6, %v255_v63, %v253_v0 }
  0xc3   : > { %v266_v3 = vmul.f32 %v1620_v61, %v258_v2  ;;  %v267_v4 = vmul.f32 %v1622_v62, %v257_v1 }
  0xc5   : > { %389 = vmatpush.msra.mxu0 %v266_v3  ;;  %409 = vmatpush.msra.mxu1 %v267_v4 }
  0xc9   : > { %v238_v12 = vpop.permute.xlu0 %237  ;;  %v369_v20 = vpop.permute.xlu1 %368 }
  0xca   : > { %v242_v13 = vsel %vm241_vm7, %v236_v7, %v238_v12  ;;  %v243_v14 = vsel %vm241_vm7, %v238_v12, %v236_v7  ;;  %v580_v7 = vld [vmem:[%s1977_s3 + $0x18] sm:$0xff] }
  0xcb   : > { %v250_v17 = vmul.f32 %v1631_v8, %v243_v14  ;;  %v251_v18 = vmul.f32 %v1633_v9, %v242_v13 }
  0xcd   : > { %390 = vmatpush.msra.mxu0 %v250_v17  ;;  %410 = vmatpush.msra.mxu1 %v251_v18 }
  0xce   : > { %1131 = vmatmul.msk.f32.vlgmr.msra.gmra.mxu0 %vm371_vm8, %v364_v19  ;;  %1132 = vmatmul.msk.f32.vlgmr.msra.gmra.mxu1 %vm371_vm8, %v364_v19 }
 0x14b   : > { %v392_v21 = vpop.f32.mrf.mxu0  ;;  %v412_v22 = vpop.f32.mrf.mxu1 }
 0x14c   : > { %v393_v25 = vadd.f32 %v392_v21, %v369_v20  ;;  %v413_v26 = vadd.f32 %v412_v22, %v369_v20 }
 0x14e   : > { %v415_v27 = vmax.f32 %v393_v25, 0.0  ;;  %v416_v28 = vmax.f32 %v413_v26, 0.0 }
 0x150   : > { %465 = vrot.lane.b32.xlu1 %v415_v27, %s1370_s23  ;;  %473 = vrot.lane.b32.xlu2 %v415_v27, %s1371_s20 }
 0x151   : > { %475 = vrot.lane.b32.xlu0 %v416_v28, %s1371_s20 }
 0x158   : > { %459 = vrot.lane.b32.xlu1 %v416_v28, %s1372_s24  ;;  %467 = vrot.lane.b32.xlu2 %v416_v28, %s1370_s23 }
 0x159   : > { %457 = vrot.lane.b32.xlu0 %v415_v27, %s1372_s24 }
 0x160   : > { %441 = vrot.lane.b32.xlu1 %v415_v27, %s1374_s25  ;;  %449 = vrot.lane.b32.xlu2 %v415_v27, %s1373_s7 }
 0x161   : > { %451 = vrot.lane.b32.xlu0 %v416_v28, %s1373_s7 }
 0x168   : > { %435 = vrot.lane.b32.xlu1 %v416_v28, %s1375_s26  ;;  %443 = vrot.lane.b32.xlu2 %v416_v28, %s1374_s25 }
 0x169   : > { %433 = vrot.lane.b32.xlu0 %v415_v27, %s1375_s26 }
 0x170   : > { %417 = vrot.lane.b32.xlu1 %v415_v27, %s1377_s28  ;;  %425 = vrot.lane.b32.xlu2 %v415_v27, %s1376_s27 }
 0x171   : > { %427 = vrot.lane.b32.xlu0 %v416_v28, %s1376_s27 }
 0x178   : > { %419 = vrot.lane.b32.xlu2 %v416_v28, %s1377_s28 }
 0x179   : > { %485 = vperm.xlu0 %1224, %v482_v47  }
 0x181   : > { %551 = vperm.xlu0 %1224, %v548_v56  }
 0x189   : > { %583 = vperm.xlu0 %1224, %v580_v7  }
 0x1aa   : > { %v474_v29 = vpop.permute.xlu2 %473 }
 0x1b2   : > { %v468_v30 = vpop.permute.xlu2 %467 }
 0x1ba   : > { %v450_v39 = vpop.permute.xlu2 %449 }
 0x1c2   : > { %v466_v31 = vpop.permute.xlu1 %465  ;;  %v444_v55 = vpop.permute.xlu2 %443 }
 0x1c3   : > { %v476_v32 = vpop.permute.xlu0 %475  ;;  %v469_v35 = vsel %vm336_vm0, %v466_v31, %v468_v30  ;;  %v470_v36 = vsel %vm336_vm0, %v468_v30, %v466_v31 }
 0x1c4   : > { %v477_v37 = vsel %vm352_vm1, %v474_v29, %v476_v32  ;;  %v478_v38 = vsel %vm352_vm1, %v476_v32, %v474_v29  ;;  %v471_v42 = vmul.f32 %v469_v35, %v1555_v15  ;;  %v472_v43 = vmul.f32 %v470_v36, %v1557_v16  ;;  %v481_v35 = vld [vmem:[%s1976_s2 + $0x8] sm:$0xff] }
 0x1c5   : > { %v479_v40 = vmul.f32 %v477_v37, %v1550_v10  ;;  %v480_v41 = vmul.f32 %v478_v38, %v1552_v11 }
 0x1c7   : > { %498 = vmatpush.msra.mxu2 %v479_v40  ;;  %518 = vmatpush.msra.mxu3 %v480_v41 }
 0x1c9   : > { %499 = vmatpush.msra.mxu2 %v471_v42  ;;  %519 = vmatpush.msra.mxu3 %v472_v43  ;;  %v1379_v43 = vmov 256.0  }
 0x1ca   : > { %v460_v44 = vpop.permute.xlu1 %459  ;;  %v426_v3 = vpop.permute.xlu2 %425  ;;  %1225 = vrcp.f32 %v1379_v43 }
 0x1cb   : > { %v458_v50 = vpop.permute.xlu0 %457 }
 0x1cc   : > { %v461_v51 = vsel %vm320_vm2, %v458_v50, %v460_v44  ;;  %v462_v52 = vsel %vm320_vm2, %v460_v44, %v458_v50 }
 0x1cd   : > { %v463_v53 = vmul.f32 %v461_v51, %v1569_v23  ;;  %v464_v54 = vmul.f32 %v462_v52, %v1571_v24 }
 0x1cf   : > { %500 = vmatpush.msra.mxu2 %v463_v53  ;;  %520 = vmatpush.msra.mxu3 %v464_v54 }
 0x1d0   : > { %v1226_v44 = vpop.eup %1225 }
 0x1d1   : > { %v535_v47 = vmul.f32 256.0, %v1226_v44  ;;  %vm539_vm9 = vweird.f32 %v1226_v44 }
 0x1d2   : > { %v442_v57 = vpop.permute.xlu1 %441  ;;  %v420_v21 = vpop.permute.xlu2 %419 }
 0x1d3   : > { %v452_v58 = vpop.permute.xlu0 %451  ;;  %v445_v1 = vsel %vm288_vm4, %v442_v57, %v444_v55  ;;  %v446_v2 = vsel %vm288_vm4, %v444_v55, %v442_v57  ;;  %v536_v50 = vsub.f32 1.0, %v535_v47  ;;  %v547_v57 = vld [vmem:[%s1976_s2 + $0x10] sm:$0xff] }
 0x1d4   : > { %v453_v59 = vsel %vm304_vm3, %v450_v39, %v452_v58  ;;  %v454_v60 = vsel %vm304_vm3, %v452_v58, %v450_v39  ;;  %v447_v4 = vmul.f32 %v446_v2, %v1596_v45  ;;  %v448_v5 = vmul.f32 %v445_v1, %v1600_v46  ;;  %v579_v1 = vld [vmem:[%s1976_s2 + $0x18] sm:$0xff] }
 0x1d5   : > { %v455_v63 = vmul.f32 %v453_v59, %v1582_v33  ;;  %v456_v0 = vmul.f32 %v454_v60, %v1584_v34  ;;  %v537_v51 = vmul.f32 %v1226_v44, %v536_v50 }
 0x1d7   : > { %501 = vmatpush.msra.mxu2 %v455_v63  ;;  %521 = vmatpush.msra.mxu3 %v456_v0  ;;  %v538_v52 = vadd.f32 %v1226_v44, %v537_v51 }
 0x1d9   : > { %502 = vmatpush.msra.mxu2 %v415_v27  ;;  %522 = vmatpush.msra.mxu3 %v416_v28  ;;  %v1724_v53 = vsel %vm539_vm9, %v1226_v44, %v538_v52 }
 0x1da   : > { %v436_v12 = vpop.permute.xlu1 %435 }
 0x1db   : > { %503 = vmatpush.msra.mxu2 %v447_v4  ;;  %523 = vmatpush.msra.mxu3 %v448_v5  ;;  %v434_v13 = vpop.permute.xlu0 %433 }
 0x1dc   : > { %v437_v14 = vsel %vm272_vm5, %v434_v13, %v436_v12  ;;  %v438_v17 = vsel %vm272_vm5, %v436_v12, %v434_v13 }
 0x1dd   : > { %v439_v18 = vmul.f32 %v438_v17, %v1603_v48  ;;  %v440_v19 = vmul.f32 %v437_v14, %v1605_v49 }
 0x1df   : > { %504 = vmatpush.msra.mxu2 %v439_v18  ;;  %524 = vmatpush.msra.mxu3 %v440_v19 }
 0x1e2   : > { %v418_v20 = vpop.permute.xlu1 %417 }
 0x1e3   : > { %v428_v22 = vpop.permute.xlu0 %427  ;;  %v421_v25 = vsel %vm241_vm7, %v418_v20, %v420_v21  ;;  %v422_v26 = vsel %vm241_vm7, %v420_v21, %v418_v20 }
 0x1e4   : > { %v429_v27 = vsel %vm256_vm6, %v426_v3, %v428_v22  ;;  %v430_v28 = vsel %vm256_vm6, %v428_v22, %v426_v3  ;;  %v423_v31 = vmul.f32 %v422_v26, %v1631_v8  ;;  %v424_v32 = vmul.f32 %v421_v25, %v1633_v9 }
 0x1e5   : > { %v431_v29 = vmul.f32 %v430_v28, %v1620_v61  ;;  %v432_v30 = vmul.f32 %v429_v27, %v1622_v62 }
 0x1e7   : > { %505 = vmatpush.msra.mxu2 %v431_v29  ;;  %525 = vmatpush.msra.mxu3 %v432_v30 }
 0x1e9   : > { %506 = vmatpush.msra.mxu2 %v423_v31  ;;  %526 = vmatpush.msra.mxu3 %v424_v32  ;;  %v705_v32 = vld [vmem:[%s1977_s3 + $0x20] sm:$0xff] }
 0x1ea   : > { %1133 = vmatmul.msk.f32.vlgmr.msra.gmra.mxu2 %vm371_vm8, %v481_v35  ;;  %1134 = vmatmul.msk.f32.vlgmr.msra.gmra.mxu3 %vm371_vm8, %v481_v35 }
 0x1eb   : > { %v486_v36 = vpop.permute.xlu0 %485 }
 0x1f3   : > { %v552_v59 = vpop.permute.xlu0 %551 }
 0x1fb   : > { %v584_v2 = vpop.permute.xlu0 %583 }
 0x26d   : > { %v508_v37 = vpop.f32.mrf.mxu2  ;;  %v528_v38 = vpop.f32.mrf.mxu3 }
 0x26e   : > { %v509_v39 = vadd.f32 %v508_v37, %v486_v36  ;;  %v529_v40 = vadd.f32 %v528_v38, %v486_v36 }
 0x270   : > { %v542_v41 = vmax.f32 %v509_v39, %v529_v40  ;;  %v531_v42 = vadd.f32 %v529_v40, %v509_v39 }
 0x272   : > { %543 = vmax.xlane.f32.xlu2 %v542_v41  ;;  %532 = vadd.xlane.f32.xlu1 %v531_v42 }
 0x2e5   : > { %v533_v54 = vpop.xlane.xlu1 %532  ;;  %v544_v56 = vpop.xlane.xlu2 %543 }
 0x2e6   : > { %v541_v55 = vmul.f32 %v1724_v53, %v533_v54 }
 0x2e8   : > { %v546_v58 = vsel %vm545_vm10, %v541_v55, %v544_v56 }
 0x2e9   : > { %573 = vmatpush.msrb.mxu0 %v546_v58 }
 0x2ea   : > { %1135 = vmatmul.msk.f32.vlgmr.msrb.gmra.mxu0 %vm554_vm11, %v547_v57 }
 0x367   : > { %v575_v60 = vpop.f32.mrf.mxu0 }
 0x368   : > { %v576_v63 = vadd.f32 %v575_v60, %v552_v59 }
 0x36a   : > { %v578_v0 = vmax.f32 %v576_v63, 0.0 }
 0x36c   : > { %604 = vmatpush.msrb.mxu1 %v578_v0 }
 0x36d   : > { %1136 = vmatmul.msk.f32.vlgmr.msrb.gmra.mxu1 %vm554_vm11, %v579_v1 }
 0x3ea   : > { %v606_v3 = vpop.f32.mrf.mxu1 }
 0x3eb   : > { %v607_v4 = vadd.f32 %v606_v3, %v584_v2 }
 0x3ed   : > { %610 = vrot.lane.b32.xlu0 %v607_v4, %s1373_s7 }
 0x45f   : > { %v611_v5 = vpop.permute.xlu0 %610 }
 0x460   : > { %v613_v7 = vmul.f32 %v611_v5, %v607_v4 }
 0x462   : > { %v1137_v12 = vmul.f32 -1.442695, %v613_v7 }
 0x464   : > { %1227 = vpow2.f32 %v1137_v12 }
 0x46a   : > { %v1228_v13 = vpop.eup %1227 }
 0x46b   : > { %v617_v14 = vadd.f32 1.0, %v1228_v13 }
 0x46d   : > { %1229 = vrcp.f32 %v617_v14  ;;  %v629_v20 = vand.u32 2147483648, %v617_v14  ;;  %v627_v22 = vand.u32 2147483647, %v617_v14  ;;  %vm623_vm13 = vweird.f32 %v617_v14 }
 0x46f   : > { %v630_v26 = vor.u32 1.1754944e-38, %v629_v20  ;;  %vm628_vm15 = vcmp.eq.f32.partialorder %v627_v22, 8.507059e+37 }
 0x473   : > { %v1230_v17 = vpop.eup %1229 }
 0x474   : > { %v619_v18 = vmul.f32 %v1230_v17, %v617_v14  ;;  %vm624_vm12 = vweird.f32 %v1230_v17 }
 0x475   : > { %vm625_vm14 = vmor %vm623_vm13, %vm624_vm12 }
 0x476   : > { %v620_v19 = vsub.f32 1.0, %v619_v18 }
 0x478   : > { %v621_v21 = vmul.f32 %v1230_v17, %v620_v19 }
 0x47a   : > { %v622_v25 = vadd.f32 %v1230_v17, %v621_v21 }
 0x47c   : > { %v626_v27 = vsel %vm625_vm14, %v1230_v17, %v622_v25 }
 0x47d   : > { %v631_v28 = vsel %vm628_vm15, %v630_v26, %v626_v27 }
 0x47e   : > { %635 = vperm.xlu0 %1224, %v631_v28  }
 0x4f0   : > { %v636_v29 = vpop.permute.xlu0 %635 }
 0x4f1   : > { %v1737_v30 = vmul.f32 %v636_v29, %v509_v39  ;;  %v1739_v31 = vmul.f32 %v636_v29, %v529_v40 }
 0x4f3   : > { %698 = vrot.lane.b32.xlu1 %v1739_v31, %s1371_s20  ;;  %688 = vrot.lane.b32.xlu0 %v1737_v30, %s1370_s23 }
 0x4f4   : > { %696 = vrot.lane.b32.xlu2 %v1737_v30, %s1371_s20 }
 0x4fb   : > { %672 = vrot.lane.b32.xlu1 %v1737_v30, %s1373_s7  ;;  %690 = vrot.lane.b32.xlu0 %v1739_v31, %s1370_s23 }
 0x4fc   : > { %682 = vrot.lane.b32.xlu2 %v1739_v31, %s1372_s24 }
 0x503   : > { %666 = vrot.lane.b32.xlu1 %v1739_v31, %s1374_s25  ;;  %680 = vrot.lane.b32.xlu0 %v1737_v30, %s1372_s24 }
 0x504   : > { %664 = vrot.lane.b32.xlu2 %v1737_v30, %s1374_s25 }
 0x50b   : > { %648 = vrot.lane.b32.xlu1 %v1737_v30, %s1376_s27  ;;  %674 = vrot.lane.b32.xlu0 %v1739_v31, %s1373_s7 }
 0x50c   : > { %658 = vrot.lane.b32.xlu2 %v1739_v31, %s1375_s26 }
 0x513   : > { %642 = vrot.lane.b32.xlu1 %v1739_v31, %s1377_s28  ;;  %656 = vrot.lane.b32.xlu0 %v1737_v30, %s1375_s26 }
 0x514   : > { %640 = vrot.lane.b32.xlu2 %v1737_v30, %s1377_s28 }
 0x51b   : > { %650 = vrot.lane.b32.xlu0 %v1739_v31, %s1376_s27 }
 0x523   : > { %708 = vperm.xlu0 %1224, %v705_v32  }
 0x54e   : > { %v697_v35 = vpop.permute.xlu2 %696 }
 0x556   : > { %v683_v50 = vpop.permute.xlu2 %682 }
 0x55e   : > { %v665_v60 = vpop.permute.xlu2 %664 }
 0x565   : > { %v699_v36 = vpop.permute.xlu1 %698  ;;  %v689_v37 = vpop.permute.xlu0 %688 }
 0x566   : > { %v700_v38 = vsel %vm352_vm1, %v697_v35, %v699_v36  ;;  %v701_v39 = vsel %vm352_vm1, %v699_v36, %v697_v35  ;;  %v659_v12 = vpop.permute.xlu2 %658 }
 0x567   : > { %v702_v40 = vmul.f32 %v700_v38, %v1550_v10  ;;  %v703_v41 = vmul.f32 %v701_v39, %v1552_v11  ;;  %v704_v39 = vld [vmem:[%s1976_s2 + $0x20] sm:$0xff] }
 0x569   : > { %721 = vmatpush.msrb.mxu2 %v702_v40  ;;  %741 = vmatpush.msrb.mxu3 %v703_v41 }
 0x56d   : > { %v673_v42 = vpop.permute.xlu1 %672  ;;  %v691_v43 = vpop.permute.xlu0 %690 }
 0x56e   : > { %v692_v44 = vsel %vm336_vm0, %v689_v37, %v691_v43  ;;  %v693_v47 = vsel %vm336_vm0, %v691_v43, %v689_v37  ;;  %v641_v25 = vpop.permute.xlu2 %640 }
 0x56f   : > { %v694_v51 = vmul.f32 %v692_v44, %v1555_v15  ;;  %v695_v52 = vmul.f32 %v693_v47, %v1557_v16 }
 0x571   : > { %722 = vmatpush.msrb.mxu2 %v694_v51  ;;  %742 = vmatpush.msrb.mxu3 %v695_v52  ;;  %v821_v51 = vld [vmem:[%s1977_s3 + $0x28] sm:$0xff]  ;;  %v879_v52 = vld [vmem:[%s1977_s3 + $0x30] sm:$0xff] }
 0x575   : > { %v681_v54 = vpop.permute.xlu0 %680  ;;  %v667_v57 = vpop.permute.xlu1 %666 }
 0x576   : > { %v684_v55 = vsel %vm320_vm2, %v681_v54, %v683_v50  ;;  %v685_v56 = vsel %vm320_vm2, %v683_v50, %v681_v54  ;;  %v668_v4 = vsel %vm288_vm4, %v665_v60, %v667_v57  ;;  %v669_v5 = vsel %vm288_vm4, %v667_v57, %v665_v60  ;;  %v910_v54 = vld [vmem:[%s1977_s3 + $0x38] sm:$0xff] }
 0x577   : > { %v686_v58 = vmul.f32 %v684_v55, %v1569_v23  ;;  %v687_v59 = vmul.f32 %v685_v56, %v1571_v24  ;;  %v670_v13 = vmul.f32 %v669_v5, %v1596_v45  ;;  %v671_v14 = vmul.f32 %v668_v4, %v1600_v46 }
 0x579   : > { %723 = vmatpush.msrb.mxu2 %v686_v58  ;;  %743 = vmatpush.msrb.mxu3 %v687_v59 }
 0x57d   : > { %v675_v63 = vpop.permute.xlu0 %674  ;;  %v649_v7 = vpop.permute.xlu1 %648 }
 0x57e   : > { %v676_v0 = vsel %vm304_vm3, %v673_v42, %v675_v63  ;;  %v677_v1 = vsel %vm304_vm3, %v675_v63, %v673_v42 }
 0x57f   : > { %v678_v2 = vmul.f32 %v676_v0, %v1582_v33  ;;  %v679_v3 = vmul.f32 %v677_v1, %v1584_v34 }
 0x581   : > { %724 = vmatpush.msrb.mxu2 %v678_v2  ;;  %744 = vmatpush.msrb.mxu3 %v679_v3 }
 0x583   : > { %725 = vmatpush.msrb.mxu2 %v1737_v30  ;;  %745 = vmatpush.msrb.mxu3 %v1739_v31 }
 0x585   : > { %v657_v17 = vpop.permute.xlu0 %656  ;;  %726 = vmatpush.msrb.mxu2 %v670_v13  ;;  %746 = vmatpush.msrb.mxu3 %v671_v14  ;;  %v643_v22 = vpop.permute.xlu1 %642 }
 0x586   : > { %v660_v18 = vsel %vm272_vm5, %v657_v17, %v659_v12  ;;  %v661_v19 = vsel %vm272_vm5, %v659_v12, %v657_v17  ;;  %v644_v27 = vsel %vm241_vm7, %v641_v25, %v643_v22  ;;  %v645_v28 = vsel %vm241_vm7, %v643_v22, %v641_v25 }
 0x587   : > { %v662_v20 = vmul.f32 %v661_v19, %v1603_v48  ;;  %v663_v21 = vmul.f32 %v660_v18, %v1605_v49  ;;  %v646_v37 = vmul.f32 %v645_v28, %v1631_v8  ;;  %v647_v38 = vmul.f32 %v644_v27, %v1633_v9 }
 0x589   : > { %727 = vmatpush.msrb.mxu2 %v662_v20  ;;  %747 = vmatpush.msrb.mxu3 %v663_v21 }
 0x58d   : > { %v651_v26 = vpop.permute.xlu0 %650 }
 0x58e   : > { %v652_v29 = vsel %vm256_vm6, %v649_v7, %v651_v26  ;;  %v653_v32 = vsel %vm256_vm6, %v651_v26, %v649_v7 }
 0x58f   : > { %v654_v35 = vmul.f32 %v653_v32, %v1620_v61  ;;  %v655_v36 = vmul.f32 %v652_v29, %v1622_v62 }
 0x591   : > { %728 = vmatpush.msrb.mxu2 %v654_v35  ;;  %748 = vmatpush.msrb.mxu3 %v655_v36 }
 0x593   : > { %729 = vmatpush.msrb.mxu2 %v646_v37  ;;  %749 = vmatpush.msrb.mxu3 %v647_v38 }
 0x594   : > { %1138 = vmatmul.msk.f32.vlgmr.msrb.gmra.mxu2 %vm371_vm8, %v704_v39  ;;  %1139 = vmatmul.msk.f32.vlgmr.msrb.gmra.mxu3 %vm371_vm8, %v704_v39 }
 0x595   : > { %v709_v40 = vpop.permute.xlu0 %708 }
 0x617   : > { %v731_v41 = vpop.f32.mrf.mxu2  ;;  %v751_v42 = vpop.f32.mrf.mxu3 }
 0x618   : > { %v732_v43 = vadd.f32 %v731_v41, %v709_v40  ;;  %v752_v44 = vadd.f32 %v751_v42, %v709_v40  ;;  %v820_v42 = vld [vmem:[%s1976_s2 + $0x28] sm:$0xff] }
 0x61a   : > { %v1831_v47 = vmax.f32 %v732_v43, 0.0  ;;  %v755_v50 = vmax.f32 %v752_v44, 0.0 }
 0x61c   : > { %804 = vrot.lane.b32.xlu0 %v1831_v47, %s1370_s23  ;;  %812 = vrot.lane.b32.xlu2 %v1831_v47, %s1371_s20 }
 0x61d   : > { %814 = vrot.lane.b32.xlu1 %v755_v50, %s1371_s20  ;;  %s1153_s20 = sshll.u32 %s1429_s22, 4 }
 0x624   : > { %798 = vrot.lane.b32.xlu0 %v755_v50, %s1372_s24  ;;  %806 = vrot.lane.b32.xlu2 %v755_v50, %s1370_s23 }
 0x625   : > { %796 = vrot.lane.b32.xlu1 %v1831_v47, %s1372_s24 }
 0x62c   : > { %780 = vrot.lane.b32.xlu0 %v1831_v47, %s1374_s25  ;;  %788 = vrot.lane.b32.xlu2 %v1831_v47, %s1373_s7 }
 0x62d   : > { %790 = vrot.lane.b32.xlu1 %v755_v50, %s1373_s7 }
 0x634   : > { %774 = vrot.lane.b32.xlu0 %v755_v50, %s1375_s26  ;;  %782 = vrot.lane.b32.xlu2 %v755_v50, %s1374_s25 }
 0x635   : > { %772 = vrot.lane.b32.xlu1 %v1831_v47, %s1375_s26  ;;  %s1035_s26 = scalar_lea.hbm %s1978_s4, %s1153_s20 }
 0x63c   : > { %756 = vrot.lane.b32.xlu0 %v1831_v47, %s1377_s28  ;;  %764 = vrot.lane.b32.xlu2 %v1831_v47, %s1376_s27 }
 0x63d   : > { %766 = vrot.lane.b32.xlu1 %v755_v50, %s1376_s27  ;;  %s1037_s27 = sshll.u32 %s232_s21, 4  ;;  %s1038_s27 = int_to_ptr.vmem [resolvable:$true] %s1037_s27 }
 0x644   : > { %758 = vrot.lane.b32.xlu2 %v755_v50, %s1377_s28  ;;  %s1039_s28 = sshll.u32 %s1035_s26, 4  ;;  %s1040_s28 = int_to_ptr.hbm [resolvable:$true] %s1039_s28 }
 0x645   : > { %824 = vperm.xlu1 %1223, %v821_v51   ;;  %s1309_s22 = sshra.s32 %s1040_s28, 4  ;;  %s1310_s22 = int_to_ptr.hbm [resolvable:$true] %s1309_s22 }
 0x646   : > { %s1311_s5 = scalar_lea.hbm %s1310_s22, 16  ;;  %p1316_p12 = scmp.lt.s32.totalorder %s1310_s22, %s1978_s4 }
 0x647   : > { %p1312_p1 = scmp.ne.s32.totalorder %s1310_s22, %s1311_s5  ;;  %p1317_p8 = scmp.lt.s32.totalorder %s1315_s12, %s1311_s5 }
 0x649   : > { %p1313_p3 = pnand %p1312_p1, %p1465_p13  ;;  %p1318_p7 = por %p1317_p8, %p1316_p12 }
 0x64b   : > { %p1314_p5 = pneg %p1313_p3 }
 0x64d   : > { %882 = vperm.xlu1 %1223, %v879_v52   ;;  %v878_v52 = vld [vmem:[%s1976_s2 + $0x30] sm:$0xff]  ;;  %p1319_p9 = pnand %p1318_p7, %p1314_p5 }
 0x655   : > { %913 = vperm.xlu1 %1223, %v910_v54  }
 0x676   : > { %v813_v55 = vpop.permute.xlu2 %812 }
 0x67e   : > { %v807_v56 = vpop.permute.xlu2 %806 }
 0x686   : > { %v789_v1 = vpop.permute.xlu2 %788 }
 0x68e   : > { %v805_v57 = vpop.permute.xlu0 %804  ;;  %v783_v17 = vpop.permute.xlu2 %782 }
 0x68f   : > { %v815_v58 = vpop.permute.xlu1 %814  ;;  %v808_v59 = vsel %vm336_vm0, %v805_v57, %v807_v56  ;;  %v809_v60 = vsel %vm336_vm0, %v807_v56, %v805_v57 }
 0x690   : > { %v816_v63 = vsel %vm352_vm1, %v813_v55, %v815_v58  ;;  %v817_v0 = vsel %vm352_vm1, %v815_v58, %v813_v55  ;;  %v810_v4 = vmul.f32 %v808_v59, %v1555_v15  ;;  %v811_v5 = vmul.f32 %v809_v60, %v1557_v16  ;;  %v909_v59 = vld [vmem:[%s1976_s2 + $0x38] sm:$0xff] }
 0x691   : > { %v818_v2 = vmul.f32 %v816_v63, %v1550_v10  ;;  %v819_v3 = vmul.f32 %v817_v0, %v1552_v11 }
 0x693   : > { %837 = vmatpush.msra.mxu0 %v818_v2  ;;  %857 = vmatpush.msra.mxu1 %v819_v3 }
 0x695   : > { %838 = vmatpush.msra.mxu0 %v810_v4  ;;  %858 = vmatpush.msra.mxu1 %v811_v5 }
 0x696   : > { %v799_v7 = vpop.permute.xlu0 %798  ;;  %v765_v22 = vpop.permute.xlu2 %764 }
 0x697   : > { %v797_v12 = vpop.permute.xlu1 %796 }
 0x698   : > { %v800_v13 = vsel %vm320_vm2, %v797_v12, %v799_v7  ;;  %v801_v14 = vsel %vm320_vm2, %v799_v7, %v797_v12 }
 0x699   : > { %v802_v10 = vmul.f32 %v800_v13, %v1569_v23  ;;  %v803_v11 = vmul.f32 %v801_v14, %v1571_v24 }
 0x69b   : > { %839 = vmatpush.msra.mxu0 %v802_v10  ;;  %859 = vmatpush.msra.mxu1 %v803_v11 }
 0x69e   : > { %v781_v15 = vpop.permute.xlu0 %780 }
 0x69f   : > { %v791_v16 = vpop.permute.xlu1 %790  ;;  %v784_v23 = vsel %vm288_vm4, %v781_v15, %v783_v17  ;;  %v785_v24 = vsel %vm288_vm4, %v783_v17, %v781_v15  ;;  %vm977_vm4 = vcmask 130048  }
 0x6a0   : > { %v792_v18 = vsel %vm304_vm3, %v789_v1, %v791_v16  ;;  %v793_v19 = vsel %vm304_vm3, %v791_v16, %v789_v1  ;;  %v786_v25 = vmul.f32 %v785_v24, %v1596_v45  ;;  %v787_v26 = vmul.f32 %v784_v23, %v1600_v46  ;;  %v759_v46 = vpop.permute.xlu2 %758  ;;  %v970_v23 = vld [vmem:[%s1976_s2 + $0x40] sm:$0xff] }
 0x6a1   : > { %v794_v20 = vmul.f32 %v792_v18, %v1582_v33  ;;  %v795_v21 = vmul.f32 %v793_v19, %v1584_v34  ;;  %v971_v18 = vld [vmem:[%s1977_s3 + $0x40] sm:$0xff] }
 0x6a3   : > { %840 = vmatpush.msra.mxu0 %v794_v20  ;;  %860 = vmatpush.msra.mxu1 %v795_v21 }
 0x6a5   : > { %841 = vmatpush.msra.mxu0 %v1831_v47  ;;  %861 = vmatpush.msra.mxu1 %v755_v50 }
 0x6a6   : > { %v775_v27 = vpop.permute.xlu0 %774 }
 0x6a7   : > { %842 = vmatpush.msra.mxu0 %v786_v25  ;;  %862 = vmatpush.msra.mxu1 %v787_v26  ;;  %v773_v33 = vpop.permute.xlu1 %772 }
 0x6a8   : > { %v776_v34 = vsel %vm272_vm5, %v773_v33, %v775_v27  ;;  %v777_v28 = vsel %vm272_vm5, %v775_v27, %v773_v33 }
 0x6a9   : > { %v778_v29 = vmul.f32 %v777_v28, %v1603_v48  ;;  %v779_v32 = vmul.f32 %v776_v34, %v1605_v49 }
 0x6ab   : > { %843 = vmatpush.msra.mxu0 %v778_v29  ;;  %863 = vmatpush.msra.mxu1 %v779_v32 }
 0x6ae   : > { %v757_v45 = vpop.permute.xlu0 %756 }
 0x6af   : > { %v767_v35 = vpop.permute.xlu1 %766  ;;  %v760_v36 = vsel %vm241_vm7, %v757_v45, %v759_v46  ;;  %v761_v37 = vsel %vm241_vm7, %v759_v46, %v757_v45 }
 0x6b0   : > { %v768_v38 = vsel %vm256_vm6, %v765_v22, %v767_v35  ;;  %v769_v39 = vsel %vm256_vm6, %v767_v35, %v765_v22  ;;  %v762_v40 = vmul.f32 %v761_v37, %v1631_v8  ;;  %v763_v41 = vmul.f32 %v760_v36, %v1633_v9 }
 0x6b1   : > { %v770_v48 = vmul.f32 %v769_v39, %v1620_v61  ;;  %v771_v49 = vmul.f32 %v768_v38, %v1622_v62 }
 0x6b3   : > { %844 = vmatpush.msra.mxu0 %v770_v48  ;;  %864 = vmatpush.msra.mxu1 %v771_v49 }
 0x6b5   : > { %845 = vmatpush.msra.mxu0 %v762_v40  ;;  %865 = vmatpush.msra.mxu1 %v763_v41 }
 0x6b6   : > { %1140 = vmatmul.msk.f32.vlgmr.msra.gmra.mxu0 %vm371_vm8, %v820_v42  ;;  %1141 = vmatmul.msk.f32.vlgmr.msra.gmra.mxu1 %vm371_vm8, %v820_v42 }
 0x6b7   : > { %v825_v6 = vpop.permute.xlu1 %824 }
 0x6bf   : > { %v883_v55 = vpop.permute.xlu1 %882 }
 0x733   : > { %v847_v61 = vpop.f32.mrf.mxu0  ;;  %v867_v43 = vpop.f32.mrf.mxu1 }
 0x734   : > { %v848_v62 = vadd.f32 %v847_v61, %v825_v6  ;;  %v868_v44 = vadd.f32 %v867_v43, %v825_v6 }
 0x736   : > { %v874_v8 = vmax.f32 %v848_v62, %v868_v44  ;;  %v870_v47 = vadd.f32 %v868_v44, %v848_v62 }
 0x738   : > { %875 = vmax.xlane.f32.xlu2 %v874_v8  ;;  %871 = vadd.xlane.f32.xlu0 %v870_v47 }
 0x7ab   : > { %v872_v9 = vpop.xlane.xlu0 %871  ;;  %v876_v51 = vpop.xlane.xlu2 %875 }
 0x7ac   : > { %v873_v50 = vmul.f32 %v872_v9, %v1724_v53  ;;  %v914_v53 = vpop.permute.xlu1 %913 }
 0x7ae   : > { %v877_v54 = vsel %vm545_vm10, %v873_v50, %v876_v51 }
 0x7af   : > { %903 = vmatpush.msra.mxu2 %v877_v54 }
 0x7b0   : > { %1142 = vmatmul.msk.f32.vlgmr.msra.gmra.mxu2 %vm554_vm11, %v878_v52 }
 0x833   : > { %v905_v56 = vpop.f32.mrf.mxu2 }
 0x834   : > { %v906_v57 = vadd.f32 %v905_v56, %v883_v55 }
 0x836   : > { %v908_v58 = vmax.f32 %v906_v57, 0.0 }
 0x838   : > { %934 = vmatpush.msra.mxu3 %v908_v58 }
 0x839   : > { %1143 = vmatmul.msk.f32.vlgmr.msra.gmra.mxu3 %vm554_vm11, %v909_v59 }
 0x8bc   : > { %v936_v60 = vpop.f32.mrf.mxu3 }
 0x8bd   : > { %v937_v63 = vadd.f32 %v936_v60, %v914_v53 }
 0x8bf   : > { %940 = vrot.lane.b32.xlu1 %v937_v63, %s1373_s7 }
 0x931   : > { %v941_v0 = vpop.permute.xlu1 %940 }
 0x932   : > { %v943_v1 = vmul.f32 %v941_v0, %v937_v63 }
 0x934   : > { %v1144_v2 = vmul.f32 -1.442695, %v943_v1 }
 0x936   : > { %1231 = vpow2.f32 %v1144_v2 }
 0x93c   : > { %v1232_v3 = vpop.eup %1231 }
 0x93d   : > { %v947_v4 = vadd.f32 1.0, %v1232_v3 }
 0x93f   : > { %1233 = vrcp.f32 %v947_v4  ;;  %v959_v13 = vand.u32 2147483648, %v947_v4  ;;  %v957_v10 = vand.u32 2147483647, %v947_v4  ;;  %vm953_vm1 = vweird.f32 %v947_v4 }
 0x941   : > { %v960_v17 = vor.u32 1.1754944e-38, %v959_v13  ;;  %vm958_vm3 = vcmp.eq.f32.partialorder %v957_v10, 8.507059e+37 }
 0x945   : > { %v1234_v5 = vpop.eup %1233 }
 0x946   : > { %v949_v7 = vmul.f32 %v1234_v5, %v947_v4  ;;  %vm954_vm0 = vweird.f32 %v1234_v5 }
 0x947   : > { %vm955_vm2 = vmor %vm953_vm1, %vm954_vm0 }
 0x948   : > { %v950_v12 = vsub.f32 1.0, %v949_v7 }
 0x94a   : > { %v951_v14 = vmul.f32 %v1234_v5, %v950_v12 }
 0x94c   : > { %v952_v11 = vadd.f32 %v1234_v5, %v951_v14 }
 0x94e   : > { %v956_v15 = vsel %vm955_vm2, %v1234_v5, %v952_v11 }
 0x94f   : > { %v961_v16 = vsel %vm958_vm3, %v960_v17, %v956_v15 }
 0x950   : > { %965 = vperm.xlu1 %1223, %v961_v16  }
 0x958   : > { %974 = vperm.xlu1 %1223, %v971_v18  }
 0x9c2   : > { %v966_v19 = vpop.permute.xlu1 %965 }
 0x9c3   : > { %v968_v20 = vmul.f32 %v966_v19, %v848_v62  ;;  %v969_v21 = vmul.f32 %v966_v19, %v868_v44 }
 0x9c5   : > { %995 = vmatpush.msrb.mxu0 %v968_v20  ;;  %1015 = vmatpush.msrb.mxu1 %v969_v21 }
 0x9c7   : > { %996 = vmatpush.msrb.mxu0 %v1737_v30  ;;  %1016 = vmatpush.msrb.mxu1 %v1739_v31 }
 0x9c8   : > { %1145 = vmatmul.msk.f32.vlgmr.msrb.gmra.mxu0 %vm977_vm4, %v970_v23  ;;  %1146 = vmatmul.msk.f32.vlgmr.msrb.gmra.mxu1 %vm977_vm4, %v970_v23 }
 0x9ca   : > { %v975_v24 = vpop.permute.xlu1 %974 }
 0xa45   : > { %v998_v22 = vpop.f32.mrf.mxu0  ;;  %v1018_v25 = vpop.f32.mrf.mxu1 }
 0xa46   : > { %v999_v26 = vadd.f32 %v998_v22, %v975_v24  ;;  %v1019_v30 = vadd.f32 %v1018_v25, %v975_v24 }
 0xa48   : > { %1021 = vst [vmem:[%s232_s21] sm:$0xff] %v999_v26 }
 0xa49   : > { %1022 = vst [vmem:[%s232_s21 + $0x8] sm:$0xff] %v1019_v30 }
 0xa4a   : > { %1322 = shalt.err (!%p1319_p9)
}
 0xa4b   : > { %1160 = dma.vmem_to_hbm [thread:$0]  (%p1465_p13), %s1038_s27, 256, %s1040_s28, %s1024_s30  }
 0xa4c PF: > { %s1051_s9 = sand.u32 1, %s1353_s15   ;;  %p1984_p10 = scmp.ge.s32.totalorder %s1365_s18, 2 }
 0xa4d   : > { %s1052_s19 = scalar_lea.sflag [#allocation4], %s1051_s9 }
 0xa4e   : > { %p1171_p11 = pnand %p1984_p10, %p1470_p4 }
 0xa50   : > { %p1172_p0 = pneg %p1171_p11 }
 0xa52   : > { %1348 = dma.done.wait (%p1172_p0), %s1052_s19, 256  }
 0xa53   : > { %1350 = vsyncadd (%p1172_p0), %s1052_s19, 4294967040  ;;  %p18_p2 = scmp.ge.s32.totalorder %s1445_s29, 4   ;;  %s1985_s15 = smov %s1357_s16 }
 0xa54   : > { %s1986_s16 = smov %s1361_s17  ;;  %s1987_s17 = smov %s1457_s6 }
 0xa55   : > { %s1988_s18 = smov %s1445_s29  ;;  %20 = sbr.rel (!%p18_p2) target bundleno = 6 (0x6), region = 92 }
 0xa5a   :  { %1058 = vsyncpa [#allocation3], 1 }
 0xa5b   :  { %1060 = vsyncpa [#allocation3 + $0x1], 1 }
 0xa5c   :  { %1061 = vsyncpa [#allocation6], 1 }
 0xa5d   :  { %1062 = vsyncpa [#allocation4], 1 }
 0xa5e   :  { %1064 = vsyncpa [#allocation4 + $0x1], 1 }

</bundles_post_ra>
